<compile_context>
chip_gen: v6e
topology: v6e:2x2x1
jax: 0.10.0
libtpu: 0.0.40
codegen_flags: <defaults>
</compile_context>

<pallas_src>
import functools

import jax
import jax.numpy as jnp
import numpy as np
from jax.experimental import pallas as pl
from jax.experimental.pallas import tpu as pltpu

_VMEM_STEP_BUDGET = 8 * 1024 * 1024     # target working set per grid step
_VMEM_LIMIT_BYTES = 32 * 1024 * 1024    # explicit scoped-VMEM limit (fits all gens)


def _interleave2(a, b, axis):
    """out[..., 2k, ...] = a[..., k, ...]; out[..., 2k+1, ...] = b[..., k, ...]."""
    stacked = jnp.concatenate(
        [jnp.expand_dims(a, axis + 1), jnp.expand_dims(b, axis + 1)], axis=axis + 1
    )
    new_shape = list(a.shape)
    new_shape[axis] = 2 * a.shape[axis]
    return stacked.reshape(tuple(new_shape))


# ---------------------------------------------------------------------------
# Kernels
# ---------------------------------------------------------------------------

def _nearest_up_kernel(x_ref, o_ref, *, pad_w, n_real, has_pad_step):
    # x_ref: (1, TH, W); o_ref: (1, 2*TH, OW), OW = 2*W (+1 if pad_w).
    h = pl.program_id(1)

    def body():
        x = x_ref[0]                              # (TH, W) -- W on lanes
        th, w = x.shape
        up_w = _interleave2(x, x, axis=1)         # (TH, 2W)  nearest along W
        up = _interleave2(up_w, up_w, axis=0)     # (2TH, 2W) nearest along H
        o_ref[0, :, : 2 * w] = up.astype(o_ref.dtype)
        if pad_w:                                 # right pad column (padY)
            o_ref[0, :, 2 * w:] = jnp.zeros(
                (2 * th, o_ref.shape[2] - 2 * w), o_ref.dtype)

    if has_pad_step:
        @pl.when(h < n_real)
        def _():
            body()

        @pl.when(h == n_real)                     # bottom pad row (padX): zeros only
        def _():
            o_ref[...] = jnp.zeros(o_ref.shape, o_ref.dtype)
    else:
        body()


def _convT_up_kernel(x_ref, w_ref, o_ref, *, pad_w, n_real, has_pad_step):
    # x_ref: (1, TH, W, C) f32; w_ref: (C, 4*C) bf16, column (2a+b)*C + d holds
    # weight[c, d, a, b]; o_ref: (1, 2*TH, OW, C).
    h = pl.program_id(1)

    def body():
        x = x_ref[0]                              # (TH, W, C)
        th, w, c = x.shape
        xf = x.reshape(th * w, c).astype(jnp.bfloat16)
        # One fused MXU matmul for all four taps, f32 accumulation.
        y = jnp.dot(xf, w_ref[...], preferred_element_type=jnp.float32)  # (TH*W, 4C)

        def tap(a, b):
            col = (2 * a + b) * c
            return y[:, col:col + c].reshape(th, w, c)

        z0 = _interleave2(tap(0, 0), tap(0, 1), axis=1)   # output rows 2i
        z1 = _interleave2(tap(1, 0), tap(1, 1), axis=1)   # output rows 2i+1
        up = _interleave2(z0, z1, axis=0)                 # (2TH, 2W, C)
        o_ref[0, :, : 2 * w, :] = up.astype(o_ref.dtype)
        if pad_w:                                         # right pad column (padY)
            o_ref[0, :, 2 * w:, :] = jnp.zeros(
                (2 * th, o_ref.shape[2] - 2 * w, c), o_ref.dtype)

    if has_pad_step:
        @pl.when(h < n_real)
        def _():
            body()

        @pl.when(h == n_real)                             # bottom pad row (padX)
        def _():
            o_ref[...] = jnp.zeros(o_ref.shape, o_ref.dtype)
    else:
        body()


# ---------------------------------------------------------------------------
# Tile-size selection (VMEM-budget driven)
# ---------------------------------------------------------------------------

def _pick_tile_h_nearest(H, W, OW, itemsize=4, budget=_VMEM_STEP_BUDGET):
    # One TH-row costs ~ W (in) + 2*OW (out) elements per (N*C) image.
    per_row = (W + 2 * OW) * itemsize
    cap = max(8, budget // max(per_row, 1))
    if H % 8 != 0:
        return H                      # full-extent block is always legal
    th = 8
    d = 8
    while d <= min(H, cap):
        if H % d == 0:
            th = d
        d += 8
    return th


def _pick_tile_h_convT(H, W, OW, C, itemsize=4, budget=_VMEM_STEP_BUDGET):
    per_row = C * (W + 2 * OW) * itemsize
    cap = max(1, budget // max(per_row, 1))
    cap = min(cap, H)
    for d in range(cap, 0, -1):       # largest divisor of H within budget
        if H % d == 0:
            return d
    return 1


# ---------------------------------------------------------------------------
# Public wrapper
# ---------------------------------------------------------------------------

def upsample_forward(x_nchw, padX, padY, *, bilinear=True, weight=None, tile_h=None):
    """Pallas version of upsample.forward. x_nchw: (N, C, H, W) float32.

    weight (only for bilinear=False): PyTorch ConvTranspose2d weight, (Cin, Cout, 2, 2).
    """
    N, C, H, W = x_nchw.shape
    OH = 2 * H + (1 if padX else 0)    # padX pads bottom of H
    OW = 2 * W + (1 if padY else 0)    # padY pads right of W
    dtype = x_nchw.dtype
    cparams = pltpu.CompilerParams(
        dimension_semantics=("parallel", "parallel"),
        vmem_limit_bytes=_VMEM_LIMIT_BYTES,
    )

    if bilinear:
        TH = tile_h if tile_h is not None else _pick_tile_h_nearest(H, W, OW)
        assert H % TH == 0, "tile_h must divide H"
        assert TH % 8 == 0 or TH == H, "input row tile must be sublane aligned"
        if padX and (2 * TH) % 8 != 0:
            # TODO(synk): H not a multiple of 4 together with bottom padding needs a
            # dedicated single-block path; not required for typical conv-net shapes.
            raise NotImplementedError("padX requires H (or tile_h) to be a multiple of 4")
        n_real = H // TH
        grid_h = n_real + (1 if padX else 0)

        kernel = functools.partial(
            _nearest_up_kernel, pad_w=bool(padY), n_real=n_real, has_pad_step=bool(padX))
        x2 = x_nchw.reshape(N * C, H, W)          # free reshape: NCHW is row-major
        out2 = pl.pallas_call(
            kernel,
            grid=(N * C, grid_h),
            in_specs=[pl.BlockSpec(
                (1, TH, W), lambda b, h: (b, jnp.minimum(h, n_real - 1), 0))],
            out_specs=pl.BlockSpec((1, 2 * TH, OW), lambda b, h: (b, h, 0)),
            out_shape=jax.ShapeDtypeStruct((N * C, OH, OW), dtype),
            compiler_params=cparams,
        )(x2)
        return out2.reshape(N, C, OH, OW)

    # ---- ConvTranspose2d(C, C, k=2, s=2, bias=False) path ----
    assert weight is not None
    TH = tile_h if tile_h is not None else _pick_tile_h_convT(H, W, OW, C)
    assert H % TH == 0, "tile_h must divide H"
    n_real = H // TH
    grid_h = n_real + (1 if padX else 0)

    # TODO(synk): ConvT path keeps channels-on-lanes (NHWC) plus the two layout
    # transposes; a lane-dense NCHW variant needs a lane-axis tap interleave and
    # is left as follow-up (this path is not the module's default).
    x_nhwc = jnp.transpose(x_nchw, (0, 2, 3, 1))
    # Fused weight: (Cin, 4*Cout) bf16, column (2a+b)*C + d holds weight[c, d, a, b].
    w_fused = jnp.transpose(weight, (0, 2, 3, 1)).reshape(C, 4 * C).astype(jnp.bfloat16)

    kernel = functools.partial(
        _convT_up_kernel, pad_w=bool(padY), n_real=n_real, has_pad_step=bool(padX))
    out_nhwc = pl.pallas_call(
        kernel,
        grid=(N, grid_h),
        in_specs=[
            pl.BlockSpec((1, TH, W, C),
                         lambda n, h: (n, jnp.minimum(h, n_real - 1), 0, 0)),
            pl.BlockSpec((C, 4 * C), lambda n, h: (0, 0)),
        ],
        out_specs=pl.BlockSpec((1, 2 * TH, OW, C), lambda n, h: (n, h, 0, 0)),
        out_shape=jax.ShapeDtypeStruct((N, OH, OW, C), dtype),
        compiler_params=cparams,
    )(x_nhwc, w_fused)
    return jnp.transpose(out_nhwc, (0, 3, 1, 2))


# ---------------------------------------------------------------------------
# Pure-JAX reference (matches the PyTorch module semantics; ConvT path emulates
# the kernel's bf16-input / f32-accumulate MXU numerics)
# ---------------------------------------------------------------------------

def upsample_ref(x, padX, padY, *, bilinear=True, weight=None):
    N, C, H, W = x.shape
    if bilinear:
        up = jnp.repeat(jnp.repeat(x, 2, axis=2), 2, axis=3)
    else:
        xb = x.astype(jnp.bfloat16).astype(jnp.float32)
        wb = weight.astype(jnp.bfloat16).astype(jnp.float32)
        up = jnp.zeros((N, C, 2 * H, 2 * W), jnp.float32)
        for a in range(2):
            for b in range(2):
                y = jnp.einsum("ncij,cd->ndij", xb, wb[:, :, a, b])
                up = up.at[:, :, a::2, b::2].set(y)
        up = up.astype(x.dtype)
    ph = 1 if padX else 0
    pw = 1 if padY else 0
    return jnp.pad(up, ((0, 0), (0, 0), (0, ph), (0, pw)))


if __name__ == "__main__":
    key = jax.random.PRNGKey(0)
    kx, kw = jax.random.split(key)

    N, C, H, W = 2, 4, 16, 16
    x = jax.random.normal(kx, (N, C, H, W), dtype=jnp.float32)
    # ConvTranspose2d(C, C, k=2, s=2, bias=False) weight: (Cin, Cout, 2, 2).
    w = jax.random.normal(kw, (C, C, 2, 2), dtype=jnp.float32) * 0.1

    # 1) Nearest (default path), pad both bottom row and right column.
    out = jax.block_until_ready(upsample_forward(x, True, True, bilinear=True))
    ref = upsample_ref(x, True, True, bilinear=True)
    assert out.shape == (N, C, 2 * H + 1, 2 * W + 1)
    np.testing.assert_allclose(np.asarray(out), np.asarray(ref), rtol=1e-5, atol=1e-6)

    # 2) Nearest, no padding.
    out = jax.block_until_ready(upsample_forward(x, False, False, bilinear=True))
    ref = upsample_ref(x, False, False, bilinear=True)
    assert out.shape == (N, C, 2 * H, 2 * W)
    np.testing.assert_allclose(np.asarray(out), np.asarray(ref), rtol=1e-5, atol=1e-6)

    # 3) Nearest, forced multi-tile grid over H (exercises pipelining + pad step).
    out = jax.block_until_ready(
        upsample_forward(x, True, False, bilinear=True, tile_h=8))
    ref = upsample_ref(x, True, False, bilinear=True)
    assert out.shape == (N, C, 2 * H + 1, 2 * W)
    np.testing.assert_allclose(np.asarray(out), np.asarray(ref), rtol=1e-5, atol=1e-6)

    # 4) ConvTranspose2d path, pad bottom row only.
    out = jax.block_until_ready(
        upsample_forward(x, True, False, bilinear=False, weight=w))
    ref = upsample_ref(x, True, False, bilinear=False, weight=w)
    assert out.shape == (N, C, 2 * H + 1, 2 * W)
    np.testing.assert_allclose(np.asarray(out), np.asarray(ref), rtol=1e-4, atol=1e-4)

    # 5) ConvTranspose2d path, multi-tile grid, pad both.
    out = jax.block_until_ready(
        upsample_forward(x, True, True, bilinear=False, weight=w, tile_h=8))
    ref = upsample_ref(x, True, True, bilinear=False, weight=w)
    assert out.shape == (N, C, 2 * H + 1, 2 * W + 1)
    np.testing.assert_allclose(np.asarray(out), np.asarray(ref), rtol=1e-4, atol=1e-4)

    print("KERNEL_OK")
</pallas_src>

<mosaic_0001>
module attributes {stable_mosaic.version = 11 : i64} {
  func.func @_nearest_up_kernel(%arg0: i32, %arg1: i32, %arg2: memref<1x16x16xf32, #tpu.memory_space<vmem>>, %arg3: memref<1x32x33xf32, #tpu.memory_space<vmem>>) attributes {dimension_semantics = [#tpu.dimension_semantics<parallel>, #tpu.dimension_semantics<parallel>], iteration_bounds = array<i64: 8, 2>, scalar_prefetch = 0 : i64, scratch_operands = 0 : i64, tpu.core_type = #tpu.core_type<tc>, window_params = [{transform_indices = @transform_0, window_bounds = array<i64: 1, 16, 16>}, {transform_indices = @transform_1, window_bounds = array<i64: 1, 32, 33>}]} {
    %c1_i32 = arith.constant 1 : i32
    %0 = arith.cmpi slt, %arg1, %c1_i32 : i32
    %1 = arith.extui %0 : i1 to i32
    %c0_i32 = arith.constant 0 : i32
    %2 = arith.cmpi ne, %1, %c0_i32 : i32
    scf.if %2 {
      %c0 = arith.constant 0 : index
      %c0_2 = arith.constant 0 : index
      %c0_3 = arith.constant 0 : index
      %6 = vector.load %arg2[%c0, %c0_2, %c0_3] : memref<1x16x16xf32, #tpu.memory_space<vmem>>, vector<1x16x16xf32>
      %7 = vector.shape_cast %6 : vector<1x16x16xf32> to vector<16x16xf32>
      %8 = vector.shape_cast %7 : vector<16x16xf32> to vector<16x16x1xf32>
      %9 = vector.shape_cast %7 : vector<16x16xf32> to vector<16x16x1xf32>
      %10 = tpu.concatenate %8, %9 in 2 : vector<16x16x1xf32>, vector<16x16x1xf32> -> vector<16x16x2xf32>
      %11 = vector.shape_cast %10 : vector<16x16x2xf32> to vector<16x32xf32>
      %12 = vector.shape_cast %11 : vector<16x32xf32> to vector<16x1x32xf32>
      %13 = vector.shape_cast %11 : vector<16x32xf32> to vector<16x1x32xf32>
      %14 = tpu.concatenate %12, %13 in 1 : vector<16x1x32xf32>, vector<16x1x32xf32> -> vector<16x2x32xf32>
      %15 = vector.shape_cast %14 : vector<16x2x32xf32> to vector<32x32xf32>
      %c0_4 = arith.constant 0 : index
      %c0_5 = arith.constant 0 : index
      %c0_6 = arith.constant 0 : index
      %16 = vector.load %arg3[%c0_4, %c0_5, %c0_6] : memref<1x32x33xf32, #tpu.memory_space<vmem>>, vector<1x32x32xf32>
      %17 = vector.shape_cast %16 : vector<1x32x32xf32> to vector<32x32xf32>
      %18 = vector.shape_cast %15 : vector<32x32xf32> to vector<1x32x32xf32>
      tpu.vector_store %arg3[%c0_4, %c0_5, %c0_6], %18 {strides = array<i32>} : memref<1x32x33xf32, #tpu.memory_space<vmem>>, vector<1x32x32xf32>,
      %cst = arith.constant 0.000000e+00 : f32
      %19 = vector.broadcast %cst : f32 to vector<32x1xf32>
      %c0_7 = arith.constant 0 : index
      %c0_8 = arith.constant 0 : index
      %c32 = arith.constant 32 : index
      %20 = vector.load %arg3[%c0_7, %c0_8, %c32] : memref<1x32x33xf32, #tpu.memory_space<vmem>>, vector<1x32x1xf32>
      %21 = vector.shape_cast %20 : vector<1x32x1xf32> to vector<32x1xf32>
      %22 = vector.shape_cast %19 : vector<32x1xf32> to vector<1x32x1xf32>
      tpu.vector_store %arg3[%c0_7, %c0_8, %c32], %22 {strides = array<i32>} : memref<1x32x33xf32, #tpu.memory_space<vmem>>, vector<1x32x1xf32>,
    } else {
    }
    %c1_i32_0 = arith.constant 1 : i32
    %3 = arith.cmpi eq, %arg1, %c1_i32_0 : i32
    %4 = arith.extui %3 : i1 to i32
    %c0_i32_1 = arith.constant 0 : i32
    %5 = arith.cmpi ne, %4, %c0_i32_1 : i32
    scf.if %5 {
      %cst = arith.constant 0.000000e+00 : f32
      %6 = vector.broadcast %cst : f32 to vector<1x32x33xf32>
      %c0 = arith.constant 0 : index
      %c0_2 = arith.constant 0 : index
      %c0_3 = arith.constant 0 : index
      %7 = vector.load %arg3[%c0, %c0_2, %c0_3] : memref<1x32x33xf32, #tpu.memory_space<vmem>>, vector<1x32x33xf32>
      tpu.vector_store %arg3[%c0, %c0_2, %c0_3], %6 {strides = array<i32>} : memref<1x32x33xf32, #tpu.memory_space<vmem>>, vector<1x32x33xf32>,
    } else {
    }
    return
  }
  func.func @transform_0(%arg0: i32, %arg1: i32) -> (i32, i32, i32) {
    %c0_i32 = arith.constant 0 : i32
    %0 = arith.minsi %arg1, %c0_i32 : i32
    %c0_i32_0 = arith.constant 0 : i32
    %c0_i32_1 = arith.constant 0 : i32
    return %arg0, %0, %c0_i32_0 : i32, i32, i32
  }
  func.func @transform_1(%arg0: i32, %arg1: i32) -> (i32, i32, i32) {
    %c0_i32 = arith.constant 0 : i32
    %c0_i32_0 = arith.constant 0 : i32
    return %arg0, %arg1, %c0_i32 : i32, i32, i32
  }
}

</mosaic_0001>

<bundles_post_ra>
// kernel: tpu_custom_call.1
= control target key start
LH: loop header
LB: loop body
LE: loop exit
PB: predicated region body
PF: predicated region fallthrough
CT: control target
= control target key end

     0   :  { %6 = vsyncpa [#allocation3], 0  ;;  %s6315_s0 = inlined_call_operand.hbm [shape: f32[8,16,16], index: 0, kind: input, shape index: {}]   ;;  %s6316_s1 = inlined_call_operand.vmem [shape: f32[8,33,33], index: 1, kind: output, shape index: {}]  }
   0x1   :  { %8 = vsyncpa [#allocation3 + $0x1], 0  ;;  %s3972_s6 = smov 0   ;;  %s3974_s7 = smov 0  }
   0x2   :  { %s3976_s8 = smov 0   ;;  %s3978_s9 = smov 0  }
   0x3   :  { %s3980_s10 = smov 0   ;;  %s3982_s11 = smov 0  }
   0x4   :  { %s3984_s12 = smov 0   ;;  %s3986_s13 = smov 0  }
   0x5   :  { %s3988_s14 = smov 0   ;;  %s3990_s15 = smov 0  }
   0x6 LB: > { %s3558_s16 = sadd.s32 4294967295, %s3906_s15   ;;  %s23_s17 = sadd.s32 1, %s3898_s13  ;;  %s3906_s15 = sphi %s3990_s15, %s14_s15   ;;  %s3902_s14 = sphi %s3988_s14, %s6653_s14   ;;  %s3898_s13 = sphi %s3986_s13, %s6652_s13   ;;  %s3894_s12 = sphi %s3984_s12, %s6651_s12   ;;  %s3890_s11 = sphi %s3982_s11, %s6650_s11   ;;  %s3886_s10 = sphi %s3980_s10, %s6649_s10   ;;  %s3882_s9 = sphi %s3978_s9, %s6648_s9   ;;  %s3878_s8 = sphi %s3976_s8, %s6647_s8   ;;  %s3874_s7 = sphi %s3974_s7, %s6646_s7   ;;  %s3870_s6 = sphi %s3972_s6, %s6645_s6  }
   0x7   : > { %p24_p0 = scmp.ge.s32.totalorder %s23_s17, 2  ;;  %s26_s18 = sadd.s32 1, %s3902_s14 }
   0x8   : > { %s39_s19 = sadd.s32 1, %s3886_s10  ;;  %p46_p2 = scmp.ne.s32.totalorder %s3886_s10, %s3882_s9 }
   0x9   : > { %s6655_s17 = smov (%p24_p0, %s23_s17), 0  ;;  %s6657_s18 = smov (!%p24_p0, %s26_s18), %s3902_s14 }
   0xa   : > { %p28_p1 = scmp.ge.s32.totalorder %s6657_s18, 8  ;;  %p47_p3 = scmp.eq.s32.totalorder %s3906_s15, 0 }
   0xb   : > { %p52_p5 = scmp.ne.s32.totalorder %s3882_s9, %s3878_s8  ;;  %p53_p6 = scmp.eq.s32.totalorder %s3558_s16, 0 }
   0xc   : > { %s6659_s18 = smov (%p28_p1, %s6657_s18), 0  ;;  %p4034_p4 = por %p47_p3, %p46_p2 }
   0xd   : > { %s34_s20 = ssub.s32 %s3902_s14, %s6659_s18  ;;  %s63_s22 = ssub.s32 %s3898_s13, %s6655_s17 }
   0xe   : > { %p37_p7 = scmp.eq.s32.totalorder %s34_s20, 0  ;;  %p4041_p8 = por %p53_p6, %p52_p5 }
   0xf   : > { %s64_s24 = sor.u32 %s63_s22, %s34_s20  ;;  %s67_s26 = sadd.s32 1, %s3874_s7 }
  0x10   : > { %s4046_s25 = scalar_select %p37_p7, %s3886_s10, %s39_s19  }
  0x11   : > { %p65_p9 = scmp.eq.s32.totalorder %s64_s24, 0  ;;  %p77_p10 = scmp.ne.s32.totalorder %s3874_s7, %s3870_s6 }
  0x12   : > { %p78_p11 = scmp.eq.s32.totalorder %s3558_s16, 15  ;;  %p3597_p13 = scmp.lt.s32.totalorder %s3906_s15, 16 }
  0x13   : > { %s4052_s27 = scalar_select %p65_p9, %s3874_s7, %s67_s26  }
  0x14   : > { %p4054_p12 = por %p78_p11, %p77_p10  ;;  %s104_s29 = sand.u32 1, %s3886_s10  }
  0x15   : > { %s3562_s30 = sshll.u32 %s104_s29, 4  ;;  %s3867_s4 = sshll.u32 %s3902_s14, 8 }
  0x16   : > { %s108_s2 = scalar_lea.vmem [#allocation2], %s3562_s30  ;;  %p4065_p0 = pnand %p3597_p13, %p4034_p4 }
  0x17   : > { %s119_s3 = sshll.u32 %s108_s2, 4  ;;  %s4072_s19 = scalar_lea.hbm %s6315_s0, %s3867_s4  ;;  %s4060_s3 = int_to_ptr.vmem [resolvable:$true] %s119_s3 }
  0x18   : > { %s4074_s20 = scalar_lea.sflag [#allocation3], %s104_s29  ;;  %s3763_s22 = scalar_lea.hbm %s4072_s19, 256 }
  0x19   : > { %p3764_p1 = scmp.ne.s32.totalorder %s4072_s19, %s3763_s22  ;;  %p3765_p2 = pneg %p4065_p0 }
  0x1a   : > { %s3768_s26 = scalar_lea.hbm %s6315_s0, 2048 }
  0x1b   : > { %p3766_p3 = pnand %p3765_p2, %p3764_p1  ;;  %p3770_p4 = scmp.lt.s32.totalorder %s3768_s26, %s3763_s22 }
  0x1d   : > { %p3767_p5 = pneg %p3766_p3 }
  0x1f   : > { %p3772_p6 = pnand %p3770_p4, %p3767_p5 }
  0x21   : > { %3775 = shalt.err (!%p3772_p6)
}
  0x22   : > { %s3776_s30 = scalar_lea.vmem %s4060_s3, 256  ;;  %s3940_s29 = smov [#allocation2]  }
  0x23   : > { %p3777_p7 = scmp.ne.s32.totalorder %s4060_s3, %s3776_s30  ;;  %s3781_s2 = sshll.u32 %s3940_s29, 4  ;;  %s3782_s2 = int_to_ptr.vmem [resolvable:$false] %s3781_s2 }
  0x24   : > { %s3783_s4 = scalar_lea.vmem %s3782_s2, 512  ;;  %p3784_p11 = scmp.lt.s32.totalorder %s4060_s3, %s3782_s2 }
  0x25   : > { %p3779_p9 = pnand %p3777_p7, %p3765_p2  ;;  %p3785_p13 = scmp.lt.s32.totalorder %s3783_s4, %s3776_s30 }
  0x27   : > { %p3780_p10 = pneg %p3779_p9  ;;  %p3786_p1 = por %p3785_p13, %p3784_p11 }
  0x29   : > { %p3787_p3 = pnand %p3786_p1, %p3780_p10 }
  0x2b   : > { %3790 = shalt.err (!%p3787_p3)
}
  0x2c   : > { %s3941_s8 = smov 128   ;;  %s3942_s16 = smov 8  }
  0x2d   : > { %3596 = dma.hbm_to_vmem [thread:$0]  (!%p4065_p0), %s4072_s19, 256, %s4060_s3, %s4074_s20, %s3941_s8, %s3941_s8, %s3942_s16  }
  0x2e   : > { %p3566_p2 = scmp.ge.s32.totalorder %s3906_s15, 1  ;;  %p127_p5 = scmp.lt.s32.totalorder %s3906_s15, 17 }
  0x30   : > { %p128_p4 = pnand %p3566_p2, %p127_p5 }
  0x31   : > { %s133_s22 = sand.u32 (!%p128_p4), 1, %s3882_s9  }
  0x32   : > { %131 = sbr.rel (%p128_p4) target bundleno = 882 (0x372), region = 24  ;;  %s4094_s21 = sshll.u32 (!%p128_p4), %s133_s22, 4 }
  0x33   : > { %s134_s24 = scalar_lea.sflag (!%p128_p4), [#allocation3], %s133_s22  ;;  %s137_s26 = scalar_lea.vmem (!%p128_p4), [#allocation2], %s4094_s21 }
  0x37   : > { %3864 = dma.done.wait (%p4041_p8), %s134_s24, 256  }
  0x38   : > { %3866 = vsyncadd (%p4041_p8), %s134_s24, 4294967040  ;;  %s152_s5 = sand.u32 1, %s3870_s6   ;;  %p3569_p0 = scmp.ge.s32.totalorder %s3890_s11, 1 }
  0x39   : > { %s3568_s3 = sshll.u32 %s152_s5, 5 }
  0x3a   : > { %s4102_s19 = scalar_lea.vmem [#allocation4], %s3568_s3   ;;  %166 = sbr.rel (%p3569_p0) target bundleno = 828 (0x33c), region = 32 }
  0x3f   : > { %v169_v0 = vlaneseq  ;;  %v167_v2 = vld [vmem:[%s137_s26] sm:$0xff]  ;;  %v168_v19 = vld [vmem:[%s137_s26 + $0x8] sm:$0xff]  ;;  %v3943_v28 = vmov 1983009808   ;;  %v3944_v30 = vmov 1934713408  }
  0x40   : > { %v347_v29 = vunpack.c.l.s4 %v3943_v28  ;;  %v362_v31 = vunpack.c.l.s4 %v3944_v30  ;;  %v6323_v43 = vmov 0.0   ;;  %s3946_s6 = smov 2   ;;  %s3947_s23 = smov 4   ;;  %vm2873_vm0 = vcmask 15360  }
  0x41   : > { %v4105_v1 = vshrl.u32 %v169_v0, 7  ;;  %s3948_s20 = smov 6   ;;  %s3949_s30 = smov 8   ;;  %vm2890_vm1 = vcmask 31744   ;;  %vm2907_vm2 = vcmask 48128   ;;  %vm2924_vm3 = vcmask 64512  }
  0x42   : > { %v348_v32 = vunpack.c.0.s8 %v347_v29  ;;  %v363_v33 = vunpack.c.0.s8 %v362_v31  ;;  %s3950_s29 = smov 10   ;;  %s3951_s2 = smov 12   ;;  %vm2941_vm4 = vcmask 80896   ;;  %vm2958_vm5 = vcmask 97280  }
  0x43   : > { %v182_v3 = vsub.s32 1, %v4105_v1  ;;  %v171_v4 = vsub.s32 0, %v4105_v1  ;;  %v193_v7 = vsub.s32 2, %v4105_v1  ;;  %v204_v9 = vsub.s32 3, %v4105_v1  ;;  %s3952_s4 = smov 14   ;;  %s3953_s8 = smov 16  }
  0x44   : > { %v215_v11 = vsub.s32 4, %v4105_v1  ;;  %v226_v13 = vsub.s32 5, %v4105_v1  ;;  %v237_v15 = vsub.s32 6, %v4105_v1  ;;  %v248_v17 = vsub.s32 7, %v4105_v1  ;;  %s3954_s16 = smov 18   ;;  %s3955_s22 = smov 20  }
  0x45   : > { %v183_v5 = vrot.slane %v167_v2, %v182_v3  ;;  %v172_v6 = vrot.slane %v167_v2, %v171_v4  ;;  %v194_v8 = vrot.slane %v167_v2, %v193_v7  ;;  %v205_v10 = vrot.slane %v167_v2, %v204_v9  ;;  %s3956_s21 = smov 22   ;;  %s3957_s24 = smov 24  }
  0x46   : > { %v216_v12 = vrot.slane %v167_v2, %v215_v11  ;;  %v227_v14 = vrot.slane %v167_v2, %v226_v13  ;;  %v238_v16 = vrot.slane %v167_v2, %v237_v15  ;;  %v249_v18 = vrot.slane %v167_v2, %v248_v17  ;;  %s3958_s26 = smov 26   ;;  %s3959_s5 = smov 28  }
  0x47   : > { %185 = vbcast.lane.b32.xlu1 %v183_v5, 256  ;;  %174 = vbcast.lane.b32.xlu0 %v172_v6, 256  ;;  %v260_v20 = vrot.slane %v168_v19, %v171_v4  ;;  %v271_v21 = vrot.slane %v168_v19, %v182_v3  ;;  %v282_v22 = vrot.slane %v168_v19, %v193_v7  ;;  %vm2975_vm6 = vcmask 113664   ;;  %s3960_s3 = smov 30  }
  0x48   : > { %v293_v23 = vrot.slane %v168_v19, %v204_v9  ;;  %v304_v24 = vrot.slane %v168_v19, %v215_v11  ;;  %v315_v25 = vrot.slane %v168_v19, %v226_v13  ;;  %v326_v26 = vrot.slane %v168_v19, %v237_v15 }
  0x49   : > { %v337_v27 = vrot.slane %v168_v19, %v248_v17  ;;  %v4120_v34 = vsub.s32 %v348_v32, %v4105_v1  ;;  %v4123_v35 = vsub.s32 %v363_v33, %v4105_v1  ;;  %vm2992_vm7 = vcmask 130048  }
  0x4a   : > { %vm3009_vm8 = vcmask 146432   ;;  %vm3026_vm9 = vcmask 162816   ;;  %vm3043_vm10 = vcmask 179200   ;;  %vm3060_vm11 = vcmask 195584  }
  0x4b   : > { %178 = vbcast.lane.b32.xlu0 %v172_v6, 264  ;;  %189 = vbcast.lane.b32.xlu1 %v183_v5, 264  ;;  %6342 = vst [vmem:[#allocation6_spill] sm:$0xff] %v4120_v34  ;;  %vm3077_vm12 = vcmask 211968   ;;  %vm3094_vm13 = vcmask 228352   ;;  %vm3111_vm14 = vcmask 244736  }
  0x4c   : > { %vm3176_vm15 = vcmask 1040384  }
  0x4f   : > { %196 = vbcast.lane.b32.xlu0 %v194_v8, 256  ;;  %200 = vbcast.lane.b32.xlu1 %v194_v8, 264 }
  0x53   : > { %207 = vbcast.lane.b32.xlu0 %v205_v10, 256  ;;  %211 = vbcast.lane.b32.xlu1 %v205_v10, 264 }
  0x57   : > { %218 = vbcast.lane.b32.xlu0 %v216_v12, 256  ;;  %222 = vbcast.lane.b32.xlu1 %v216_v12, 264 }
  0x5b   : > { %229 = vbcast.lane.b32.xlu0 %v227_v14, 256  ;;  %233 = vbcast.lane.b32.xlu1 %v227_v14, 264 }
  0x5f   : > { %240 = vbcast.lane.b32.xlu0 %v238_v16, 256  ;;  %244 = vbcast.lane.b32.xlu1 %v238_v16, 264 }
  0x63   : > { %251 = vbcast.lane.b32.xlu0 %v249_v18, 256  ;;  %255 = vbcast.lane.b32.xlu1 %v249_v18, 264 }
  0x67   : > { %262 = vbcast.lane.b32.xlu0 %v260_v20, 256  ;;  %266 = vbcast.lane.b32.xlu1 %v260_v20, 264 }
  0x6b   : > { %273 = vbcast.lane.b32.xlu0 %v271_v21, 256  ;;  %277 = vbcast.lane.b32.xlu1 %v271_v21, 264 }
  0x6f   : > { %284 = vbcast.lane.b32.xlu0 %v282_v22, 256  ;;  %288 = vbcast.lane.b32.xlu1 %v282_v22, 264 }
  0x73   : > { %295 = vbcast.lane.b32.xlu0 %v293_v23, 256  ;;  %299 = vbcast.lane.b32.xlu1 %v293_v23, 264 }
  0x77   : > { %306 = vbcast.lane.b32.xlu0 %v304_v24, 256  ;;  %310 = vbcast.lane.b32.xlu1 %v304_v24, 264 }
  0x7b   : > { %317 = vbcast.lane.b32.xlu0 %v315_v25, 256  ;;  %321 = vbcast.lane.b32.xlu1 %v315_v25, 264 }
  0x7f   : > { %328 = vbcast.lane.b32.xlu0 %v326_v26, 256  ;;  %332 = vbcast.lane.b32.xlu1 %v326_v26, 264 }
  0x83   : > { %339 = vbcast.lane.b32.xlu0 %v337_v27, 256  ;;  %343 = vbcast.lane.b32.xlu1 %v337_v27, 264 }
  0xb9   : > { %v4125_v36 = vpop.permute.xlu1 %185  ;;  %v4127_v37 = vpop.permute.xlu0 %174 }
  0xba   : > { %v4131_v38 = vrot.slane %v4125_v36, %v4120_v34  ;;  %v4135_v39 = vrot.slane %v4127_v37, %v4120_v34 }
  0xbc   : > { %v4139_v40 = vrot.slane %v4131_v38, %v4123_v35  ;;  %v4143_v41 = vrot.slane %v4135_v39, %v4123_v35 }
  0xbd   : > { %v4145_v42 = vpop.permute.xlu0 %178 }
  0xbe   : > { %v488_v44 = vcombine.high %v4139_v40, %v6323_v43  ;;  %v390_v45 = vcombine.high %v4143_v41, %v6323_v43 }
  0xc0   : > { %1931 = vrot.lane.b32.xlu1 %v488_v44, %s3946_s6  ;;  %1929 = vrot.lane.b32.xlu0 %v390_v45, %s3946_s6  ;;  %v360_v44 = vcombine.high %v4135_v39, %v6323_v43 }
  0xc1   : > { %v4153_v46 = vpop.permute.xlu0 %196 }
  0xc2   : > { %v4157_v47 = vrot.slane %v4153_v46, %v4120_v34  ;;  %v374_v39 = vrot.slane %v360_v44, %v4123_v35 }
  0xc4   : > { %v4161_v48 = vrot.slane %v4157_v47, %v4123_v35 }
  0xc5   : > { %v4163_v49 = vpop.permute.xlu0 %207 }
  0xc6   : > { %v4167_v50 = vrot.slane %v4163_v49, %v4120_v34  ;;  %v586_v51 = vcombine.high %v4161_v48, %v6323_v43 }
  0xc8   : > { %v4173_v52 = vrot.slane %v4167_v50, %v4123_v35  ;;  %1933 = vrot.lane.b32.xlu0 %v586_v51, %s3946_s6 }
  0xc9   : > { %v4176_v53 = vpop.permute.xlu0 %218 }
  0xca   : > { %6343 = vst [vmem:[#allocation7_spill] sm:$0xff] %v4173_v52  ;;  %v4180_v54 = vrot.slane %v4176_v53, %v4120_v34  ;;  %v684_v55 = vcombine.high %v4173_v52, %v6323_v43 }
  0xcc   : > { %v4186_v56 = vrot.slane %v4180_v54, %v4123_v35  ;;  %1935 = vrot.lane.b32.xlu1 %v684_v55, %s3946_s6 }
  0xcd   : > { %v4189_v57 = vpop.permute.xlu0 %229 }
  0xce   : > { %6344 = vst [vmem:[#allocation8_spill] sm:$0xff] %v4186_v56  ;;  %v4193_v58 = vrot.slane %v4189_v57, %v4120_v34  ;;  %v782_v59 = vcombine.high %v4186_v56, %v6323_v43 }
  0xd0   : > { %v4199_v60 = vrot.slane %v4193_v58, %v4123_v35  ;;  %1937 = vrot.lane.b32.xlu0 %v782_v59, %s3946_s6  ;;  %v4315_v59 = vpop.permute.xlu1 %189 }
  0xd1   : > { %v4202_v61 = vpop.permute.xlu0 %240 }
  0xd2   : > { %6345 = vst [vmem:[#allocation9_spill] sm:$0xff] %v4199_v60  ;;  %v4206_v62 = vrot.slane %v4202_v61, %v4120_v34  ;;  %v880_v63 = vcombine.high %v4199_v60, %v6323_v43 }
  0xd4   : > { %v4212_v0 = vrot.slane %v4206_v62, %v4123_v35  ;;  %1939 = vrot.lane.b32.xlu1 %v880_v63, %s3946_s6  ;;  %v458_v63 = vcombine.high %v4131_v38, %v6323_v43  ;;  %v4331_v38 = vpop.permute.xlu1 %200 }
  0xd5   : > { %v4215_v1 = vpop.permute.xlu0 %251 }
  0xd6   : > { %6346 = vst [vmem:[#allocation10_spill] sm:$0xff] %v4212_v0  ;;  %v4219_v2 = vrot.slane %v4215_v1, %v4120_v34  ;;  %v978_v3 = vcombine.high %v4212_v0, %v6323_v43 }
  0xd8   : > { %v4225_v4 = vrot.slane %v4219_v2, %v4123_v35  ;;  %1941 = vrot.lane.b32.xlu0 %v978_v3, %s3946_s6  ;;  %v556_v3 = vcombine.high %v4157_v47, %v6323_v43  ;;  %v1046_v44 = vcombine.high %v4219_v2, %v6323_v43 }
  0xd9   : > { %v4228_v5 = vpop.permute.xlu0 %262 }
  0xda   : > { %6347 = vst [vmem:[#allocation11_spill] sm:$0xff] %v4225_v4  ;;  %v4232_v6 = vrot.slane %v4228_v5, %v4120_v34  ;;  %v1076_v7 = vcombine.high %v4225_v4, %v6323_v43  ;;  %v570_v47 = vrot.slane %v556_v3, %v4123_v35 }
  0xdc   : > { %v4238_v8 = vrot.slane %v4232_v6, %v4123_v35  ;;  %1943 = vrot.lane.b32.xlu1 %v1076_v7, %s3946_s6 }
  0xdd   : > { %v4241_v9 = vpop.permute.xlu0 %273 }
  0xde   : > { %6348 = vst [vmem:[#allocation12_spill] sm:$0xff] %v4238_v8  ;;  %v4245_v10 = vrot.slane %v4241_v9, %v4120_v34  ;;  %v1174_v11 = vcombine.high %v4238_v8, %v6323_v43 }
  0xe0   : > { %v4251_v12 = vrot.slane %v4245_v10, %v4123_v35  ;;  %1945 = vrot.lane.b32.xlu0 %v1174_v11, %s3946_s6  ;;  %v654_v11 = vcombine.high %v4167_v50, %v6323_v43 }
  0xe1   : > { %v4254_v13 = vpop.permute.xlu0 %284 }
  0xe2   : > { %6349 = vst [vmem:[#allocation13_spill] sm:$0xff] %v4251_v12  ;;  %v1332_v14 = vrot.slane %v4254_v13, %v4120_v34  ;;  %v1272_v15 = vcombine.high %v4251_v12, %v6323_v43 }
  0xe4   : > { %v4261_v16 = vrot.slane %v1332_v14, %v4123_v35  ;;  %1947 = vrot.lane.b32.xlu1 %v1272_v15, %s3946_s6  ;;  %v752_v15 = vcombine.high %v4180_v54, %v6323_v43  ;;  %v668_v54 = vrot.slane %v654_v11, %v4123_v35  ;;  %v1340_v3 = vcombine.high %v1332_v14, %v6323_v43 }
  0xe5   : > { %v4264_v17 = vpop.permute.xlu0 %295  ;;  %v1060_v11 = vrot.slane %v1046_v44, %v4123_v35 }
  0xe6   : > { %6350 = vst [vmem:[#allocation14_spill] sm:$0xff] %v4261_v16  ;;  %v1430_v18 = vrot.slane %v4264_v17, %v4120_v34  ;;  %v1370_v19 = vcombine.high %v4261_v16, %v6323_v43  ;;  %v766_v50 = vrot.slane %v752_v15, %v4123_v35 }
  0xe8   : > { %v4271_v20 = vrot.slane %v1430_v18, %v4123_v35  ;;  %1949 = vrot.lane.b32.xlu0 %v1370_v19, %s3946_s6  ;;  %v472_v19 = vrot.slane %v458_v63, %v4123_v35  ;;  %v1242_v63 = vcombine.high %v4245_v10, %v6323_v43 }
  0xe9   : > { %v4274_v21 = vpop.permute.xlu0 %306 }
  0xea   : > { %6351 = vst [vmem:[#allocation15_spill] sm:$0xff] %v4271_v20  ;;  %v1528_v22 = vrot.slane %v4274_v21, %v4120_v34  ;;  %v1468_v23 = vcombine.high %v4271_v20, %v6323_v43  ;;  %v1256_v10 = vrot.slane %v1242_v63, %v4123_v35 }
  0xec   : > { %v4281_v24 = vrot.slane %v1528_v22, %v4123_v35  ;;  %1951 = vrot.lane.b32.xlu1 %v1468_v23, %s3946_s6  ;;  %v850_v23 = vcombine.high %v4193_v58, %v6323_v43  ;;  %v1536_v15 = vcombine.high %v1528_v22, %v6323_v43 }
  0xed   : > { %v4284_v25 = vpop.permute.xlu0 %317 }
  0xee   : > { %6352 = vst [vmem:[#allocation16_spill] sm:$0xff] %v4281_v24  ;;  %v1626_v26 = vrot.slane %v4284_v25, %v4120_v34  ;;  %v1566_v27 = vcombine.high %v4281_v24, %v6323_v43 }
  0xf0   : > { %v4291_v28 = vrot.slane %v1626_v26, %v4123_v35  ;;  %1953 = vrot.lane.b32.xlu0 %v1566_v27, %s3946_s6  ;;  %v948_v27 = vcombine.high %v4206_v62, %v6323_v43  ;;  %v864_v62 = vrot.slane %v850_v23, %v4123_v35  ;;  %v1354_v23 = vrot.slane %v1340_v3, %v4123_v35 }
  0xf1   : > { %v4294_v29 = vpop.permute.xlu0 %328  ;;  %v1634_v14 = vcombine.high %v1626_v26, %v6323_v43  ;;  %v391_v26 = vcombine.high %v374_v39, %v6323_v43 }
  0xf2   : > { %6353 = vst [vmem:[#allocation17_spill] sm:$0xff] %v4291_v28  ;;  %v1724_v30 = vrot.slane %v4294_v29, %v4120_v34  ;;  %v1664_v31 = vcombine.high %v4291_v28, %v6323_v43  ;;  %v962_v58 = vrot.slane %v948_v27, %v4123_v35 }
  0xf4   : > { %v4301_v32 = vrot.slane %v1724_v30, %v4123_v35  ;;  %1955 = vrot.lane.b32.xlu1 %v1664_v31, %s3946_s6  ;;  %v4343_v31 = vpop.permute.xlu1 %211  ;;  %v1732_v44 = vcombine.high %v1724_v30, %v6323_v43 }
  0xf5   : > { %v4304_v33 = vpop.permute.xlu0 %339 }
  0xf6   : > { %6354 = vst [vmem:[#allocation18_spill] sm:$0xff] %v4301_v32  ;;  %v1822_v45 = vrot.slane %v4304_v33, %v4120_v34  ;;  %v1762_v51 = vcombine.high %v4301_v32, %v6323_v43  ;;  %v1746_v3 = vrot.slane %v1732_v44, %v4123_v35  ;;  %v685_v44 = vcombine.high %v668_v54, %v6323_v43 }
  0xf8   : > { %v4313_v55 = vrot.slane %v1822_v45, %v4123_v35  ;;  %1957 = vrot.lane.b32.xlu0 %v1762_v51, %s3946_s6  ;;  %v1144_v51 = vcombine.high %v4232_v6, %v6323_v43  ;;  %v1438_v6 = vcombine.high %v1430_v18, %v6323_v43  ;;  %v1830_v22 = vcombine.high %v1822_v45, %v6323_v43 }
  0xf9   : > { %v587_v45 = vcombine.high %v570_v47, %v6323_v43 }
  0xfa   : > { %6355 = vst [vmem:[#allocation19_spill] sm:$0xff] %v4313_v55  ;;  %v1860_v7 = vcombine.high %v4313_v55, %v6323_v43  ;;  %v1158_v2 = vrot.slane %v1144_v51, %v4123_v35  ;;  %v1550_v51 = vrot.slane %v1536_v15, %v4123_v35  ;;  %v1452_v18 = vrot.slane %v1438_v6, %v4123_v35 }
  0xfb   : > { %v1648_v55 = vrot.slane %v1634_v14, %v4123_v35  ;;  %v1844_v30 = vrot.slane %v1830_v22, %v4123_v35  ;;  %v489_v15 = vcombine.high %v472_v19, %v6323_v43  ;;  %v979_v22 = vcombine.high %v962_v58, %v6323_v43 }
  0xfc   : > { %1993 = vrot.lane.b32.xlu0 %v374_v39, %s3947_s23  ;;  %1959 = vrot.lane.b32.xlu1 %v1860_v7, %s3946_s6  ;;  %v4358_v7 = vpop.permute.xlu1 %222  ;;  %v783_v39 = vcombine.high %v766_v50, %v6323_v43 }
 0x100   : > { %1997 = vrot.lane.b32.xlu0 %v570_v47, %s3947_s23  ;;  %1995 = vrot.lane.b32.xlu1 %v472_v19, %s3947_s23  ;;  %v4368_v27 = vpop.permute.xlu1 %233  ;;  %v881_v47 = vcombine.high %v864_v62, %v6323_v43  ;;  %v1175_v19 = vcombine.high %v1158_v2, %v6323_v43 }
 0x104   : > { %2001 = vrot.lane.b32.xlu0 %v766_v50, %s3947_s23  ;;  %1999 = vrot.lane.b32.xlu1 %v668_v54, %s3947_s23  ;;  %v4379_v63 = vpop.permute.xlu1 %244  ;;  %v1077_v50 = vcombine.high %v1060_v11, %v6323_v43 }
 0x108   : > { %2005 = vrot.lane.b32.xlu0 %v962_v58, %s3947_s23  ;;  %2003 = vrot.lane.b32.xlu1 %v864_v62, %s3947_s23  ;;  %v4387_v6 = vpop.permute.xlu1 %255  ;;  %v1371_v58 = vcombine.high %v1354_v23, %v6323_v43  ;;  %v1273_v62 = vcombine.high %v1256_v10, %v6323_v43 }
 0x10c   : > { %2009 = vrot.lane.b32.xlu0 %v1158_v2, %s3947_s23  ;;  %2007 = vrot.lane.b32.xlu1 %v1060_v11, %s3947_s23  ;;  %v4395_v14 = vpop.permute.xlu1 %266  ;;  %v1567_v2 = vcombine.high %v1550_v51, %v6323_v43  ;;  %v1469_v11 = vcombine.high %v1452_v18, %v6323_v43 }
 0x110   : > { %2013 = vrot.lane.b32.xlu0 %v1354_v23, %s3947_s23  ;;  %2011 = vrot.lane.b32.xlu1 %v1256_v10, %s3947_s23  ;;  %v443_v23 = vcombine.high %v4125_v36, %v6323_v43  ;;  %v639_v36 = vcombine.high %v4163_v49, %v6323_v43 }
 0x112   : > { %v4457_v49 = vrot.slane %v639_v36, %v4120_v34 }
 0x114   : > { %2017 = vrot.lane.b32.xlu0 %v1550_v51, %s3947_s23  ;;  %2015 = vrot.lane.b32.xlu1 %v1452_v18, %s3947_s23  ;;  %v1665_v51 = vcombine.high %v1648_v55, %v6323_v43  ;;  %v4437_v18 = vrot.slane %v443_v23, %v4120_v34 }
 0x118   : > { %2021 = vrot.lane.b32.xlu0 %v1746_v3, %s3947_s23  ;;  %2019 = vrot.lane.b32.xlu1 %v1648_v55, %s3947_s23 }
 0x11c   : > { %2057 = vrot.lane.b32.xlu0 %v391_v26, %s3948_s20  ;;  %2023 = vrot.lane.b32.xlu1 %v1844_v30, %s3947_s23  ;;  %v4403_v26 = vpop.permute.xlu1 %277 }
 0x120   : > { %2061 = vrot.lane.b32.xlu0 %v587_v45, %s3948_s20  ;;  %2059 = vrot.lane.b32.xlu1 %v489_v15, %s3948_s20  ;;  %v4411_v54 = vpop.permute.xlu1 %288  ;;  %v345_v45 = vcombine.high %v4127_v37, %v6323_v43  ;;  %v1763_v37 = vcombine.high %v1746_v3, %v6323_v43  ;;  %v1861_v3 = vcombine.high %v1844_v30, %v6323_v43 }
 0x122   : > { %v4428_v10 = vrot.slane %v345_v45, %v4120_v34  ;;  %v1129_v45 = vcombine.high %v4228_v5, %v6323_v43  ;;  %v1325_v5 = vcombine.high %v4254_v13, %v6323_v43 }
 0x124   : > { %2065 = vrot.lane.b32.xlu0 %v783_v39, %s3948_s20  ;;  %2063 = vrot.lane.b32.xlu1 %v685_v44, %s3948_s20  ;;  %v4421_v15 = vpop.permute.xlu1 %299  ;;  %v541_v39 = vcombine.high %v4153_v46, %v6323_v43  ;;  %v737_v46 = vcombine.high %v4176_v53, %v6323_v43  ;;  %v4450_v55 = vrot.slane %v4428_v10, %v4123_v35 }
 0x125   : > { %v835_v53 = vcombine.high %v4189_v57, %v6323_v43  ;;  %v4520_v13 = vrot.slane %v1325_v5, %v4120_v34 }
 0x126   : > { %v4442_v44 = vrot.slane %v541_v39, %v4120_v34  ;;  %v4502_v39 = vrot.slane %v1129_v45, %v4120_v34  ;;  %v1619_v45 = vcombine.high %v4284_v25, %v6323_v43 }
 0x127   : > { %v4481_v57 = vrot.slane %v835_v53, %v4120_v34  ;;  %v1362_v32 = vrot.slane %v4520_v13, %v4123_v35 }
 0x128   : > { %2069 = vrot.lane.b32.xlu0 %v979_v22, %s3948_s20  ;;  %2067 = vrot.lane.b32.xlu1 %v881_v47, %s3948_s20  ;;  %v4446_v22 = vpop.permute.xlu1 %310  ;;  %v4462_v47 = vrot.slane %v737_v46, %v4120_v34  ;;  %v4468_v30 = vrot.slane %v4442_v44, %v4123_v35  ;;  %v1423_v46 = vcombine.high %v4264_v17, %v6323_v43 }
 0x129   : > { %v872_v36 = vrot.slane %v4481_v57, %v4123_v35  ;;  %v1166_v53 = vrot.slane %v4502_v39, %v4123_v35  ;;  %v4551_v25 = vrot.slane %v1619_v45, %v4120_v34 }
 0x12a   : > { %v4533_v17 = vrot.slane %v1423_v46, %v4120_v34 }
 0x12b   : > { %v1656_v12 = vrot.slane %v4551_v25, %v4123_v35 }
 0x12c   : > { %2073 = vrot.lane.b32.xlu0 %v1175_v19, %s3948_s20  ;;  %2071 = vrot.lane.b32.xlu1 %v1077_v50, %s3948_s20  ;;  %v933_v19 = vcombine.high %v4202_v61, %v6323_v43  ;;  %v4472_v50 = vrot.slane %v4437_v18, %v4123_v35  ;;  %v1031_v61 = vcombine.high %v4215_v1, %v6323_v43 }
 0x12d   : > { %v1227_v1 = vcombine.high %v4241_v9, %v6323_v43  ;;  %v1460_v16 = vrot.slane %v4533_v17, %v4123_v35 }
 0x12e   : > { %v4497_v23 = vrot.slane %v1031_v61, %v4120_v34 }
 0x12f   : > { %v4515_v9 = vrot.slane %v1227_v1, %v4120_v34  ;;  %v1717_v1 = vcombine.high %v4294_v29, %v6323_v43  ;;  %v1815_v29 = vcombine.high %v4304_v33, %v6323_v43 }
 0x130   : > { %2077 = vrot.lane.b32.xlu0 %v1371_v58, %s3948_s20  ;;  %2075 = vrot.lane.b32.xlu1 %v1273_v62, %s3948_s20  ;;  %v4474_v58 = vpop.permute.xlu1 %321  ;;  %v4486_v62 = vrot.slane %v933_v19, %v4120_v34  ;;  %v1068_v19 = vrot.slane %v4497_v23, %v4123_v35 }
 0x131   : > { %v1264_v28 = vrot.slane %v4515_v9, %v4123_v35  ;;  %v4554_v46 = vrot.slane %v1717_v1, %v4120_v34  ;;  %v4569_v45 = vrot.slane %v1815_v29, %v4120_v34  ;;  %v6360_v29 = vmov 0.0  }
 0x132   : > { %v4542_v5 = vpop.permute.xlu0 %1929  ;;  %v392_v0 = vcombine.high %v4450_v55, %v6360_v29  ;;  %v588_v56 = vcombine.high %v4468_v30, %v6360_v29 }
 0x133   : > { %v1852_v60 = vrot.slane %v4569_v45, %v4123_v35 }
 0x134   : > { %2081 = vrot.lane.b32.xlu0 %v1567_v2, %s3948_s20  ;;  %2079 = vrot.lane.b32.xlu1 %v1469_v11, %s3948_s20  ;;  %v774_v2 = vrot.slane %v4462_v47, %v4123_v35  ;;  %v676_v11 = vrot.slane %v4457_v49, %v4123_v35 }
 0x138   : > { %2085 = vrot.lane.b32.xlu0 %v1763_v37, %s3948_s20  ;;  %2083 = vrot.lane.b32.xlu1 %v1665_v51, %s3948_s20  ;;  %v4506_v37 = vpop.permute.xlu1 %332  ;;  %v970_v51 = vrot.slane %v4486_v62, %v4123_v35 }
 0x13a   : > { %v4560_v24 = vpop.permute.xlu0 %1933 }
 0x13c   : > { %2121 = vrot.lane.b32.xlu0 %v4450_v55, %s3949_s30  ;;  %2087 = vrot.lane.b32.xlu1 %v1861_v3, %s3948_s20  ;;  %v1521_v3 = vcombine.high %v4274_v21, %v6323_v43  ;;  %v4528_v61 = vpop.permute.xlu1 %343  ;;  %v1754_v43 = vrot.slane %v4554_v46, %v4123_v35  ;;  %v784_v55 = vcombine.high %v774_v2, %v6360_v29 }
 0x13e   : > { %v4538_v21 = vrot.slane %v1521_v3, %v4120_v34 }
 0x140   : > { %2125 = vrot.lane.b32.xlu0 %v4468_v30, %s3949_s30  ;;  %2123 = vrot.lane.b32.xlu1 %v4472_v50, %s3949_s30  ;;  %v4558_v3 = vpop.permute.xlu1 %1931  ;;  %v1558_v20 = vrot.slane %v4538_v21, %v4123_v35  ;;  %v980_v30 = vcombine.high %v970_v51, %v6360_v29 }
 0x142   : > { %v4573_v33 = vpop.permute.xlu0 %1937 }
 0x143   : > { %6357 = vst [vmem:[#allocation21_spill] sm:$0xff] %v4573_v33 }
 0x144   : > { %2129 = vrot.lane.b32.xlu0 %v774_v2, %s3949_s30  ;;  %2127 = vrot.lane.b32.xlu1 %v676_v11, %s3949_s30  ;;  %v4571_v1 = vpop.permute.xlu1 %1935  ;;  %v1078_v2 = vcombine.high %v1068_v19, %v6360_v29 }
 0x145   : > { %6356 = vst [vmem:[#allocation20_spill] sm:$0xff] %v4571_v1 }
 0x148   : > { %2133 = vrot.lane.b32.xlu0 %v970_v51, %s3949_s30  ;;  %2131 = vrot.lane.b32.xlu1 %v872_v36, %s3949_s30  ;;  %v4581_v8 = vpop.permute.xlu1 %1939  ;;  %v1372_v51 = vcombine.high %v1362_v32, %v6360_v29 }
 0x149   : > { %6358 = vst [vmem:[#allocation22_spill] sm:$0xff] %v4581_v8 }
 0x14a   : > { %v4583_v4 = vpop.permute.xlu0 %1941 }
 0x14b   : > { %6359 = vst [vmem:[#allocation23_spill] sm:$0xff] %v4583_v4  ;;  %v490_v4 = vcombine.high %v4472_v50, %v6360_v29  ;;  %v882_v50 = vcombine.high %v872_v36, %v6360_v29  ;;  %v1274_v36 = vcombine.high %v1264_v28, %v6360_v29 }
 0x14c   : > { %2137 = vrot.lane.b32.xlu0 %v1166_v53, %s3949_s30  ;;  %2135 = vrot.lane.b32.xlu1 %v1068_v19, %s3949_s30  ;;  %v1470_v19 = vcombine.high %v1460_v16, %v6360_v29 }
 0x14e   : > { %v4593_v33 = vpop.permute.xlu1 %1943 }
 0x150   : > { %2141 = vrot.lane.b32.xlu0 %v1362_v32, %s3949_s30  ;;  %2139 = vrot.lane.b32.xlu1 %v1264_v28, %s3949_s30  ;;  %v375_v28 = vcombine.high %v4428_v10, %v6360_v29  ;;  %v1764_v32 = vcombine.high %v1754_v43, %v6360_v29  ;;  %v1862_v10 = vcombine.high %v1852_v60, %v6360_v29 }
 0x152   : > { %v4595_v52 = vpop.permute.xlu0 %1945 }
 0x153   : > { %6361 = vst [vmem:[#allocation24_spill] sm:$0xff] %v4595_v52 }
 0x154   : > { %2145 = vrot.lane.b32.xlu0 %v1558_v20, %s3949_s30  ;;  %2143 = vrot.lane.b32.xlu1 %v1460_v16, %s3949_s30  ;;  %v473_v16 = vcombine.high %v4437_v18, %v6360_v29  ;;  %v767_v18 = vcombine.high %v4462_v47, %v6360_v29 }
 0x156   : > { %v4603_v8 = vpop.permute.xlu1 %1947 }
 0x157   : > { %6362 = vst [vmem:[#allocation25_spill] sm:$0xff] %v4603_v8 }
 0x158   : > { %2149 = vrot.lane.b32.xlu0 %v1754_v43, %s3949_s30  ;;  %2147 = vrot.lane.b32.xlu1 %v1656_v12, %s3949_s30 }
 0x15a   : > { %v4605_v1 = vpop.permute.xlu0 %1949 }
 0x15b   : > { %6363 = vst [vmem:[#allocation26_spill] sm:$0xff] %v4605_v1 }
 0x15c   : > { %2185 = vrot.lane.b32.xlu0 %v392_v0, %s3950_s29  ;;  %2151 = vrot.lane.b32.xlu1 %v1852_v60, %s3949_s30  ;;  %v686_v0 = vcombine.high %v676_v11, %v6360_v29 }
 0x15e   : > { %v4611_v52 = vpop.permute.xlu1 %1951 }
 0x15f   : > { %6364 = vst [vmem:[#allocation27_spill] sm:$0xff] %v4611_v52 }
 0x160   : > { %2189 = vrot.lane.b32.xlu0 %v588_v56, %s3950_s29  ;;  %2187 = vrot.lane.b32.xlu1 %v490_v4, %s3950_s29  ;;  %v1176_v4 = vcombine.high %v1166_v53, %v6360_v29  ;;  %v1568_v53 = vcombine.high %v1558_v20, %v6360_v29 }
 0x162   : > { %v4613_v56 = vpop.permute.xlu0 %1953 }
 0x163   : > { %6365 = vst [vmem:[#allocation28_spill] sm:$0xff] %v4613_v56 }
 0x164   : > { %2193 = vrot.lane.b32.xlu0 %v784_v55, %s3950_s29  ;;  %2191 = vrot.lane.b32.xlu1 %v686_v0, %s3950_s29 }
 0x166   : > { %v4619_v11 = vpop.permute.xlu1 %1955 }
 0x167   : > { %6366 = vst [vmem:[#allocation29_spill] sm:$0xff] %v4619_v11 }
 0x168   : > { %2197 = vrot.lane.b32.xlu0 %v980_v30, %s3950_s29  ;;  %2195 = vrot.lane.b32.xlu1 %v882_v50, %s3950_s29 }
 0x16a   : > { %v4621_v55 = vpop.permute.xlu0 %1957 }
 0x16b   : > { %6367 = vst [vmem:[#allocation30_spill] sm:$0xff] %v4621_v55  ;;  %v4953_v55 = vrot.slane %v4528_v61, %v4120_v34 }
 0x16c   : > { %2201 = vrot.lane.b32.xlu0 %v1176_v4, %s3950_s29  ;;  %2199 = vrot.lane.b32.xlu1 %v1078_v2, %s3950_s29  ;;  %v1666_v2 = vcombine.high %v1656_v12, %v6360_v29  ;;  %v389_v12 = vrot.slane %v375_v28, %v4123_v35  ;;  %v865_v28 = vcombine.high %v4481_v57, %v6360_v29 }
 0x16d   : > { %v1159_v57 = vcombine.high %v4502_v39, %v6360_v29 }
 0x16e   : > { %v4627_v0 = vpop.permute.xlu1 %1959  ;;  %v4629_v30 = vpop.permute.xlu0 %1993 }
 0x16f   : > { %6368 = vst [vmem:[#allocation31_spill] sm:$0xff] %v4627_v0  ;;  %6369 = vst [vmem:[#allocation32_spill] sm:$0xff] %v4629_v30 }
 0x170   : > { %2205 = vrot.lane.b32.xlu0 %v1372_v51, %s3950_s29  ;;  %2203 = vrot.lane.b32.xlu1 %v1274_v36, %s3950_s29  ;;  %v571_v36 = vcombine.high %v4442_v44, %v6360_v29 }
 0x172   : > { %v4635_v50 = vpop.permute.xlu1 %1995  ;;  %v4637_v4 = vpop.permute.xlu0 %1997 }
 0x173   : > { %6370 = vst [vmem:[#allocation33_spill] sm:$0xff] %v4635_v50  ;;  %6371 = vst [vmem:[#allocation34_spill] sm:$0xff] %v4637_v4  ;;  %v4935_v4 = vrot.slane %v4474_v58, %v4120_v34  ;;  %v4939_v50 = vrot.slane %v4506_v37, %v4120_v34 }
 0x174   : > { %2209 = vrot.lane.b32.xlu0 %v1568_v53, %s3950_s29  ;;  %2207 = vrot.lane.b32.xlu1 %v1470_v19, %s3950_s29  ;;  %v669_v19 = vcombine.high %v4457_v49, %v6360_v29  ;;  %v963_v49 = vcombine.high %v4486_v62, %v6360_v29 }
 0x175   : > { %v1690_v30 = vrot.slane %v4935_v4, %v4123_v35  ;;  %v1788_v0 = vrot.slane %v4939_v50, %v4123_v35 }
 0x176   : > { %v4645_v51 = vpop.permute.xlu1 %1999  ;;  %v4647_v20 = vpop.permute.xlu0 %2001 }
 0x177   : > { %6372 = vst [vmem:[#allocation35_spill] sm:$0xff] %v4645_v51  ;;  %6373 = vst [vmem:[#allocation36_spill] sm:$0xff] %v4647_v20 }
 0x178   : > { %2213 = vrot.lane.b32.xlu0 %v1764_v32, %s3950_s29  ;;  %2211 = vrot.lane.b32.xlu1 %v1666_v2, %s3950_s29  ;;  %v585_v32 = vrot.slane %v571_v36, %v4123_v35  ;;  %v487_v2 = vrot.slane %v473_v16, %v4123_v35  ;;  %v683_v36 = vrot.slane %v669_v19, %v4123_v35 }
 0x179   : > { %v1061_v16 = vcombine.high %v4497_v23, %v6360_v29  ;;  %v1257_v19 = vcombine.high %v4515_v9, %v6360_v29  ;;  %v1355_v23 = vcombine.high %v4520_v13, %v6360_v29  ;;  %v1551_v9 = vcombine.high %v4538_v21, %v6360_v29 }
 0x17a   : > { %v4656_v53 = vpop.permute.xlu1 %2003  ;;  %v4658_v43 = vpop.permute.xlu0 %2005 }
 0x17b   : > { %6374 = vst [vmem:[#allocation37_spill] sm:$0xff] %v4656_v53  ;;  %6375 = vst [vmem:[#allocation38_spill] sm:$0xff] %v4658_v43  ;;  %v4917_v43 = vrot.slane %v4421_v15, %v4120_v34  ;;  %v4921_v53 = vrot.slane %v4446_v22, %v4120_v34 }
 0x17c   : > { %2249 = vrot.lane.b32.xlu0 %v389_v12, %s3951_s2  ;;  %2215 = vrot.lane.b32.xlu1 %v1862_v10, %s3950_s29 }
 0x17d   : > { %v1494_v20 = vrot.slane %v4917_v43, %v4123_v35  ;;  %v1592_v51 = vrot.slane %v4921_v53, %v4123_v35 }
 0x17e   : > { %v4667_v44 = vpop.permute.xlu1 %2007  ;;  %v4669_v60 = vpop.permute.xlu0 %2009 }
 0x17f   : > { %6376 = vst [vmem:[#allocation39_spill] sm:$0xff] %v4667_v44  ;;  %6377 = vst [vmem:[#allocation40_spill] sm:$0xff] %v4669_v60  ;;  %v781_v60 = vrot.slane %v767_v18, %v4123_v35  ;;  %v879_v18 = vrot.slane %v865_v28, %v4123_v35  ;;  %v1453_v28 = vcombine.high %v4533_v17, %v6360_v29 }
 0x180   : > { %2253 = vrot.lane.b32.xlu0 %v585_v32, %s3951_s2  ;;  %2251 = vrot.lane.b32.xlu1 %v487_v2, %s3951_s2  ;;  %v1747_v17 = vcombine.high %v4554_v46, %v6360_v29 }
 0x182   : > { %v4679_v10 = vpop.permute.xlu1 %2011  ;;  %v4681_v47 = vpop.permute.xlu0 %2013  ;;  %v1761_v46 = vrot.slane %v1747_v17, %v4123_v35 }
 0x183   : > { %6378 = vst [vmem:[#allocation41_spill] sm:$0xff] %v4679_v10  ;;  %6379 = vst [vmem:[#allocation42_spill] sm:$0xff] %v4681_v47  ;;  %v977_v47 = vrot.slane %v963_v49, %v4123_v35  ;;  %v1075_v49 = vrot.slane %v1061_v16, %v4123_v35  ;;  %v1649_v16 = vcombine.high %v4551_v25, %v6360_v29 }
 0x184   : > { %2257 = vrot.lane.b32.xlu0 %v781_v60, %s3951_s2  ;;  %2255 = vrot.lane.b32.xlu1 %v683_v36, %s3951_s2 }
 0x186   : > { %v4691_v44 = vpop.permute.xlu1 %2015  ;;  %v4693_v62 = vpop.permute.xlu0 %2017 }
 0x187   : > { %6380 = vst [vmem:[#allocation43_spill] sm:$0xff] %v4691_v44  ;;  %6381 = vst [vmem:[#allocation44_spill] sm:$0xff] %v4693_v62  ;;  %v1173_v62 = vrot.slane %v1159_v57, %v4123_v35  ;;  %v1271_v57 = vrot.slane %v1257_v19, %v4123_v35  ;;  %v1845_v19 = vcombine.high %v4569_v45, %v6360_v29 }
 0x188   : > { %2261 = vrot.lane.b32.xlu0 %v977_v47, %s3951_s2  ;;  %2259 = vrot.lane.b32.xlu1 %v879_v18, %s3951_s2  ;;  %v393_v45 = vcombine.high %v389_v12, %v6360_v29 }
 0x18a   : > { %v4703_v10 = vpop.permute.xlu1 %2019  ;;  %v4705_v39 = vpop.permute.xlu0 %2021 }
 0x18b   : > { %6382 = vst [vmem:[#allocation45_spill] sm:$0xff] %v4703_v10  ;;  %6383 = vst [vmem:[#allocation46_spill] sm:$0xff] %v4705_v39  ;;  %v1369_v39 = vrot.slane %v1355_v23, %v4123_v35  ;;  %v1467_v23 = vrot.slane %v1453_v28, %v4123_v35 }
 0x18c   : > { %2265 = vrot.lane.b32.xlu0 %v1173_v62, %s3951_s2  ;;  %2263 = vrot.lane.b32.xlu1 %v1075_v49, %s3951_s2 }
 0x18e   : > { %v4715_v44 = vpop.permute.xlu1 %2023  ;;  %v4717_v13 = vpop.permute.xlu0 %2057 }
 0x18f   : > { %6384 = vst [vmem:[#allocation47_spill] sm:$0xff] %v4715_v44  ;;  %6385 = vst [vmem:[#allocation48_spill] sm:$0xff] %v4717_v13  ;;  %v1565_v13 = vrot.slane %v1551_v9, %v4123_v35 }
 0x190   : > { %2269 = vrot.lane.b32.xlu0 %v1369_v39, %s3951_s2  ;;  %2267 = vrot.lane.b32.xlu1 %v1271_v57, %s3951_s2 }
 0x192   : > { %v4727_v10 = vpop.permute.xlu1 %2059  ;;  %v4729_v21 = vpop.permute.xlu0 %2061 }
 0x193   : > { %6386 = vst [vmem:[#allocation49_spill] sm:$0xff] %v4727_v10  ;;  %6387 = vst [vmem:[#allocation50_spill] sm:$0xff] %v4729_v21  ;;  %v1663_v10 = vrot.slane %v1649_v16, %v4123_v35  ;;  %v1859_v21 = vrot.slane %v1845_v19, %v4123_v35 }
 0x194   : > { %2273 = vrot.lane.b32.xlu0 %v1565_v13, %s3951_s2  ;;  %2271 = vrot.lane.b32.xlu1 %v1467_v23, %s3951_s2 }
 0x196   : > { %v4737_v44 = vpop.permute.xlu1 %2063  ;;  %v4739_v25 = vpop.permute.xlu0 %2065 }
 0x197   : > { %6388 = vst [vmem:[#allocation51_spill] sm:$0xff] %v4737_v44  ;;  %6389 = vst [vmem:[#allocation52_spill] sm:$0xff] %v4739_v25  ;;  %v491_v25 = vcombine.high %v487_v2, %v6360_v29  ;;  %v589_v44 = vcombine.high %v585_v32, %v6360_v29  ;;  %v883_v32 = vcombine.high %v879_v18, %v6360_v29 }
 0x198   : > { %2277 = vrot.lane.b32.xlu0 %v1761_v46, %s3951_s2  ;;  %2275 = vrot.lane.b32.xlu1 %v1663_v10, %s3951_s2 }
 0x19a   : > { %v4745_v28 = vpop.permute.xlu1 %2067  ;;  %v4747_v9 = vpop.permute.xlu0 %2069 }
 0x19b   : > { %6390 = vst [vmem:[#allocation53_spill] sm:$0xff] %v4745_v28  ;;  %6391 = vst [vmem:[#allocation54_spill] sm:$0xff] %v4747_v9  ;;  %v687_v9 = vcombine.high %v683_v36, %v6360_v29 }
 0x19c   : > { %2279 = vrot.lane.b32.xlu1 %v1859_v21, %s3951_s2  ;;  %2313 = vrot.lane.b32.xlu0 %v393_v45, %s3952_s4  ;;  %v785_v45 = vcombine.high %v781_v60, %v6360_v29  ;;  %v1079_v60 = vcombine.high %v1075_v49, %v6360_v29 }
 0x19e   : > { %v4753_v17 = vpop.permute.xlu1 %2071  ;;  %v4755_v16 = vpop.permute.xlu0 %2073 }
 0x19f   : > { %6392 = vst [vmem:[#allocation55_spill] sm:$0xff] %v4753_v17  ;;  %6393 = vst [vmem:[#allocation56_spill] sm:$0xff] %v4755_v16 }
 0x1a0   : > { %2315 = vrot.lane.b32.xlu1 %v491_v25, %s3952_s4  ;;  %2317 = vrot.lane.b32.xlu0 %v589_v44, %s3952_s4  ;;  %v981_v44 = vcombine.high %v977_v47, %v6360_v29  ;;  %v1275_v47 = vcombine.high %v1271_v57, %v6360_v29  ;;  %v4803_v57 = vrot.slane %v4145_v42, %v4120_v34 }
 0x1a2   : > { %v4761_v19 = vpop.permute.xlu1 %2075  ;;  %v4763_v12 = vpop.permute.xlu0 %2077 }
 0x1a3   : > { %6394 = vst [vmem:[#allocation57_spill] sm:$0xff] %v4761_v19  ;;  %6395 = vst [vmem:[#allocation58_spill] sm:$0xff] %v4763_v12  ;;  %v4903_v19 = vrot.slane %v4411_v54, %v4120_v34 }
 0x1a4   : > { %2319 = vrot.lane.b32.xlu1 %v687_v9, %s3952_s4  ;;  %2321 = vrot.lane.b32.xlu0 %v785_v45, %s3952_s4  ;;  %v1177_v9 = vcombine.high %v1173_v62, %v6360_v29  ;;  %v1471_v62 = vcombine.high %v1467_v23, %v6360_v29  ;;  %v4819_v23 = vrot.slane %v4315_v59, %v4120_v34 }
 0x1a5   : > { %v1396_v28 = vrot.slane %v4903_v19, %v4123_v35 }
 0x1a6   : > { %v4769_v16 = vpop.permute.xlu1 %2079  ;;  %v4771_v2 = vpop.permute.xlu0 %2081 }
 0x1a7   : > { %6396 = vst [vmem:[#allocation59_spill] sm:$0xff] %v4769_v16  ;;  %6397 = vst [vmem:[#allocation60_spill] sm:$0xff] %v4771_v2  ;;  %v4885_v2 = vrot.slane %v4395_v14, %v4120_v34 }
 0x1a8   : > { %2323 = vrot.lane.b32.xlu1 %v883_v32, %s3952_s4  ;;  %2325 = vrot.lane.b32.xlu0 %v981_v44, %s3952_s4  ;;  %v1373_v32 = vcombine.high %v1369_v39, %v6360_v29 }
 0x1a9   : > { %v1200_v12 = vrot.slane %v4885_v2, %v4123_v35 }
 0x1aa   : > { %v4777_v25 = vpop.permute.xlu1 %2083  ;;  %v4779_v36 = vpop.permute.xlu0 %2085 }
 0x1ab   : > { %6398 = vst [vmem:[#allocation61_spill] sm:$0xff] %v4777_v25  ;;  %6399 = vst [vmem:[#allocation62_spill] sm:$0xff] %v4779_v36  ;;  %v4881_v25 = vrot.slane %v4387_v6, %v4120_v34  ;;  %v4899_v36 = vrot.slane %v4403_v26, %v4120_v34 }
 0x1ac   : > { %2327 = vrot.lane.b32.xlu1 %v1079_v60, %s3952_s4  ;;  %2329 = vrot.lane.b32.xlu0 %v1177_v9, %s3952_s4  ;;  %v1569_v60 = vcombine.high %v1565_v13, %v6360_v29  ;;  %v4815_v13 = vrot.slane %v4803_v57, %v4123_v35 }
 0x1ad   : > { %v1102_v16 = vrot.slane %v4881_v25, %v4123_v35  ;;  %v1298_v17 = vrot.slane %v4899_v36, %v4123_v35 }
 0x1ae   : > { %v4785_v45 = vpop.permute.xlu1 %2087  ;;  %v4787_v18 = vpop.permute.xlu0 %2121  ;;  %v439_v1 = vcombine.high %v4815_v13, %v6360_v29 }
 0x1af   : > { %6400 = vst [vmem:[#allocation63_spill] sm:$0xff] %v4785_v45  ;;  %6401 = vst [vmem:[#allocation64_spill] sm:$0xff] %v4787_v18 }
 0x1b0   : > { %2331 = vrot.lane.b32.xlu1 %v1275_v47, %s3952_s4  ;;  %2333 = vrot.lane.b32.xlu0 %v1373_v32, %s3952_s4  ;;  %v1667_v47 = vcombine.high %v1663_v10, %v6360_v29  ;;  %v1765_v32 = vcombine.high %v1761_v46, %v6360_v29  ;;  %v1863_v46 = vcombine.high %v1859_v21, %v6360_v29 }
 0x1b1   : > { %v4847_v21 = vrot.slane %v4358_v7, %v4120_v34 }
 0x1b2   : > { %v4793_v44 = vpop.permute.xlu1 %2123  ;;  %v4795_v49 = vpop.permute.xlu0 %2125 }
 0x1b3   : > { %6402 = vst [vmem:[#allocation65_spill] sm:$0xff] %v4793_v44  ;;  %6403 = vst [vmem:[#allocation66_spill] sm:$0xff] %v4795_v49  ;;  %v4863_v49 = vrot.slane %v4368_v27, %v4120_v34 }
 0x1b4   : > { %2335 = vrot.lane.b32.xlu1 %v1471_v62, %s3952_s4  ;;  %2337 = vrot.lane.b32.xlu0 %v1569_v60, %s3952_s4  ;;  %v4823_v62 = vrot.slane %v4331_v38, %v4120_v34 }
 0x1b5   : > { %v906_v18 = vrot.slane %v4863_v49, %v4123_v35 }
 0x1b6   : > { %v4805_v39 = vpop.permute.xlu1 %2127  ;;  %v4807_v9 = vpop.permute.xlu0 %2129 }
 0x1b7   : > { %6404 = vst [vmem:[#allocation67_spill] sm:$0xff] %v4805_v39  ;;  %6405 = vst [vmem:[#allocation68_spill] sm:$0xff] %v4807_v9  ;;  %v808_v39 = vrot.slane %v4847_v21, %v4123_v35 }
 0x1b8   : > { %2339 = vrot.lane.b32.xlu1 %v1667_v47, %s3952_s4  ;;  %2341 = vrot.lane.b32.xlu0 %v1765_v32, %s3952_s4  ;;  %v4835_v47 = vrot.slane %v4819_v23, %v4123_v35  ;;  %v4839_v32 = vrot.slane %v4823_v62, %v4123_v35 }
 0x1ba   : > { %v4825_v60 = vpop.permute.xlu1 %2131  ;;  %v4827_v10 = vpop.permute.xlu0 %2133  ;;  %v537_v8 = vcombine.high %v4835_v47, %v6360_v29 }
 0x1bb   : > { %6406 = vst [vmem:[#allocation69_spill] sm:$0xff] %v4825_v60  ;;  %6407 = vst [vmem:[#allocation70_spill] sm:$0xff] %v4827_v10  ;;  %v4843_v60 = vrot.slane %v4343_v31, %v4120_v34 }
 0x1bc   : > { %2343 = vrot.lane.b32.xlu1 %v1863_v46, %s3952_s4  ;;  %2377 = vrot.lane.b32.xlu0 %v4815_v13, %s3953_s8 }
 0x1bd   : > { %v710_v9 = vrot.slane %v4843_v60, %v4123_v35 }
 0x1be   : > { %v4849_v46 = vpop.permute.xlu1 %2135  ;;  %v4851_v10 = vpop.permute.xlu0 %2137 }
 0x1bf   : > { %6408 = vst [vmem:[#allocation71_spill] sm:$0xff] %v4849_v46  ;;  %6409 = vst [vmem:[#allocation72_spill] sm:$0xff] %v4851_v10  ;;  %v4867_v46 = vrot.slane %v4379_v63, %v4120_v34 }
 0x1c0   : > { %2379 = vrot.lane.b32.xlu1 %v4835_v47, %s3953_s8  ;;  %2381 = vrot.lane.b32.xlu0 %v4839_v32, %s3953_s8 }
 0x1c1   : > { %v1004_v45 = vrot.slane %v4867_v46, %v4123_v35 }
 0x1c2   : > { %v4869_v10 = vpop.permute.xlu1 %2139  ;;  %v4871_v44 = vpop.permute.xlu0 %2141 }
 0x1c3   : > { %6410 = vst [vmem:[#allocation73_spill] sm:$0xff] %v4869_v10  ;;  %6411 = vst [vmem:[#allocation74_spill] sm:$0xff] %v4871_v44 }
 0x1c4   : > { %2383 = vrot.lane.b32.xlu1 %v710_v9, %s3953_s8  ;;  %2385 = vrot.lane.b32.xlu0 %v808_v39, %s3953_s8 }
 0x1c6   : > { %v4887_v10 = vpop.permute.xlu1 %2143  ;;  %v4889_v44 = vpop.permute.xlu0 %2145 }
 0x1c7   : > { %6412 = vst [vmem:[#allocation75_spill] sm:$0xff] %v4887_v10  ;;  %6413 = vst [vmem:[#allocation76_spill] sm:$0xff] %v4889_v44 }
 0x1c8   : > { %2387 = vrot.lane.b32.xlu1 %v906_v18, %s3953_s8  ;;  %2389 = vrot.lane.b32.xlu0 %v1004_v45, %s3953_s8 }
 0x1ca   : > { %v4905_v10 = vpop.permute.xlu1 %2147  ;;  %v4907_v44 = vpop.permute.xlu0 %2149 }
 0x1cb   : > { %6414 = vst [vmem:[#allocation77_spill] sm:$0xff] %v4905_v10  ;;  %6415 = vst [vmem:[#allocation78_spill] sm:$0xff] %v4907_v44 }
 0x1cc   : > { %2391 = vrot.lane.b32.xlu1 %v1102_v16, %s3953_s8  ;;  %2393 = vrot.lane.b32.xlu0 %v1200_v12, %s3953_s8 }
 0x1ce   : > { %v4923_v10 = vpop.permute.xlu1 %2151  ;;  %v4925_v44 = vpop.permute.xlu0 %2185 }
 0x1cf   : > { %6416 = vst [vmem:[#allocation79_spill] sm:$0xff] %v4923_v10  ;;  %6417 = vst [vmem:[#allocation80_spill] sm:$0xff] %v4925_v44 }
 0x1d0   : > { %2395 = vrot.lane.b32.xlu1 %v1298_v17, %s3953_s8  ;;  %2397 = vrot.lane.b32.xlu0 %v1396_v28, %s3953_s8 }
 0x1d2   : > { %v4941_v10 = vpop.permute.xlu1 %2187  ;;  %v4943_v44 = vpop.permute.xlu0 %2189 }
 0x1d3   : > { %6418 = vst [vmem:[#allocation81_spill] sm:$0xff] %v4941_v10  ;;  %6419 = vst [vmem:[#allocation82_spill] sm:$0xff] %v4943_v44  ;;  %v1886_v44 = vrot.slane %v4953_v55, %v4123_v35 }
 0x1d4   : > { %2399 = vrot.lane.b32.xlu1 %v1494_v20, %s3953_s8  ;;  %2401 = vrot.lane.b32.xlu0 %v1592_v51, %s3953_s8 }
 0x1d6   : > { %v4955_v11 = vpop.permute.xlu1 %2191  ;;  %v4957_v56 = vpop.permute.xlu0 %2193 }
 0x1d7   : > { %6420 = vst [vmem:[#allocation83_spill] sm:$0xff] %v4955_v11  ;;  %6421 = vst [vmem:[#allocation84_spill] sm:$0xff] %v4957_v56 }
 0x1d8   : > { %2403 = vrot.lane.b32.xlu1 %v1690_v30, %s3953_s8  ;;  %2405 = vrot.lane.b32.xlu0 %v1788_v0, %s3953_s8 }
 0x1da   : > { %v4963_v10 = vpop.permute.xlu1 %2195  ;;  %v4965_v52 = vpop.permute.xlu0 %2197 }
 0x1db   : > { %6422 = vst [vmem:[#allocation85_spill] sm:$0xff] %v4963_v10  ;;  %6423 = vst [vmem:[#allocation86_spill] sm:$0xff] %v4965_v52  ;;  %v635_v10 = vcombine.high %v4839_v32, %v6360_v29 }
 0x1dc   : > { %2407 = vrot.lane.b32.xlu1 %v1886_v44, %s3953_s8  ;;  %2441 = vrot.lane.b32.xlu0 %v439_v1, %s3954_s16  ;;  %v733_v1 = vcombine.high %v710_v9, %v6360_v29 }
 0x1de   : > { %v4971_v56 = vpop.permute.xlu1 %2199  ;;  %v4973_v11 = vpop.permute.xlu0 %2201 }
 0x1df   : > { %6424 = vst [vmem:[#allocation87_spill] sm:$0xff] %v4971_v56  ;;  %6425 = vst [vmem:[#allocation88_spill] sm:$0xff] %v4973_v11  ;;  %v831_v56 = vcombine.high %v808_v39, %v6360_v29  ;;  %v1125_v39 = vcombine.high %v1102_v16, %v6360_v29 }
 0x1e0   : > { %2443 = vrot.lane.b32.xlu1 %v537_v8, %s3954_s16  ;;  %2445 = vrot.lane.b32.xlu0 %v635_v10, %s3954_s16  ;;  %v929_v8 = vcombine.high %v906_v18, %v6360_v29  ;;  %v1027_v10 = vcombine.high %v1004_v45, %v6360_v29  ;;  %v1321_v45 = vcombine.high %v1298_v17, %v6360_v29 }
 0x1e1   : > { %v409_v17 = vcombine.high %v4803_v57, %v6360_v29 }
 0x1e2   : > { %v4981_v13 = vpop.permute.xlu1 %2203  ;;  %v4983_v52 = vpop.permute.xlu0 %2205 }
 0x1e3   : > { %6426 = vst [vmem:[#allocation89_spill] sm:$0xff] %v4981_v13  ;;  %6427 = vst [vmem:[#allocation90_spill] sm:$0xff] %v4983_v52 }
 0x1e4   : > { %2447 = vrot.lane.b32.xlu1 %v733_v1, %s3954_s16  ;;  %2449 = vrot.lane.b32.xlu0 %v831_v56, %s3954_s16  ;;  %v1223_v56 = vcombine.high %v1200_v12, %v6360_v29  ;;  %v1517_v12 = vcombine.high %v1494_v20, %v6360_v29  ;;  %v605_v20 = vcombine.high %v4823_v62, %v6360_v29 }
 0x1e6   : > { %v4989_v47 = vpop.permute.xlu1 %2207  ;;  %v4991_v11 = vpop.permute.xlu0 %2209 }
 0x1e7   : > { %6428 = vst [vmem:[#allocation91_spill] sm:$0xff] %v4989_v47  ;;  %6429 = vst [vmem:[#allocation92_spill] sm:$0xff] %v4991_v11 }
 0x1e8   : > { %2451 = vrot.lane.b32.xlu1 %v929_v8, %s3954_s16  ;;  %2453 = vrot.lane.b32.xlu0 %v1027_v10, %s3954_s16  ;;  %v1419_v8 = vcombine.high %v1396_v28, %v6360_v29 }
 0x1ea   : > { %v4997_v32 = vpop.permute.xlu1 %2211  ;;  %v4999_v9 = vpop.permute.xlu0 %2213 }
 0x1eb   : > { %6430 = vst [vmem:[#allocation93_spill] sm:$0xff] %v4997_v32 }
 0x1ec   : > { %2455 = vrot.lane.b32.xlu1 %v1125_v39, %s3954_s16  ;;  %2457 = vrot.lane.b32.xlu0 %v1223_v56, %s3954_s16  ;;  %v1615_v39 = vcombine.high %v1592_v51, %v6360_v29  ;;  %v507_v51 = vcombine.high %v4819_v23, %v6360_v29  ;;  %v801_v23 = vcombine.high %v4847_v21, %v6360_v29 }
 0x1ee   : > { %v5005_v1 = vpop.permute.xlu1 %2215  ;;  %v5007_v18 = vpop.permute.xlu0 %2249 }
 0x1f0   : > { %2459 = vrot.lane.b32.xlu1 %v1321_v45, %s3954_s16  ;;  %2461 = vrot.lane.b32.xlu0 %v1419_v8, %s3954_s16  ;;  %v1713_v45 = vcombine.high %v1690_v30, %v6360_v29  ;;  %v1811_v8 = vcombine.high %v1788_v0, %v6360_v29  ;;  %v423_v30 = vrot.slane %v409_v17, %v4123_v35 }
 0x1f1   : > { %v703_v0 = vcombine.high %v4843_v60, %v6360_v29  ;;  %v899_v17 = vcombine.high %v4863_v49, %v6360_v29  ;;  %v997_v60 = vcombine.high %v4867_v46, %v6360_v29  ;;  %v1193_v49 = vcombine.high %v4885_v2, %v6360_v29 }
 0x1f2   : > { %v5013_v10 = vpop.permute.xlu1 %2251  ;;  %v5015_v16 = vpop.permute.xlu0 %2253 }
 0x1f3   : > { %v717_v32 = vrot.slane %v703_v0, %v4123_v35  ;;  %v913_v47 = vrot.slane %v899_v17, %v4123_v35  ;;  %v1011_v0 = vrot.slane %v997_v60, %v4123_v35  ;;  %v1207_v17 = vrot.slane %v1193_v49, %v4123_v35 }
 0x1f4   : > { %2463 = vrot.lane.b32.xlu1 %v1517_v12, %s3954_s16  ;;  %2465 = vrot.lane.b32.xlu0 %v1615_v39, %s3954_s16  ;;  %v1909_v39 = vcombine.high %v1886_v44, %v6360_v29  ;;  %v619_v44 = vrot.slane %v605_v20, %v4123_v35  ;;  %v1095_v20 = vcombine.high %v4881_v25, %v6360_v29 }
 0x1f5   : > { %v1389_v25 = vcombine.high %v4903_v19, %v6360_v29  ;;  %v1487_v60 = vcombine.high %v4917_v43, %v6360_v29  ;;  %v1683_v49 = vcombine.high %v4935_v4, %v6360_v29  ;;  %v1781_v43 = vcombine.high %v4939_v50, %v6360_v29 }
 0x1f6   : > { %v5023_v28 = vpop.permute.xlu1 %2255  ;;  %v5025_v56 = vpop.permute.xlu0 %2257 }
 0x1f7   : > { %6431 = vst [vmem:[#allocation94_spill] sm:$0xff] %v5023_v28  ;;  %6432 = vst [vmem:[#allocation95_spill] sm:$0xff] %v5025_v56  ;;  %v1501_v52 = vrot.slane %v1487_v60, %v4123_v35  ;;  %v1697_v50 = vrot.slane %v1683_v49, %v4123_v35 }
 0x1f8   : > { %2467 = vrot.lane.b32.xlu1 %v1713_v45, %s3954_s16  ;;  %2469 = vrot.lane.b32.xlu0 %v1811_v8, %s3954_s16  ;;  %v521_v8 = vrot.slane %v507_v51, %v4123_v35  ;;  %v815_v51 = vrot.slane %v801_v23, %v4123_v35  ;;  %v1291_v23 = vcombine.high %v4899_v36, %v6360_v29 }
 0x1f9   : > { %v1585_v36 = vcombine.high %v4921_v53, %v6360_v29 }
 0x1fa   : > { %v5035_v12 = vpop.permute.xlu1 %2259  ;;  %v5037_v57 = vpop.permute.xlu0 %2261 }
 0x1fb   : > { %6433 = vst [vmem:[#allocation96_spill] sm:$0xff] %v5035_v12  ;;  %6434 = vst [vmem:[#allocation97_spill] sm:$0xff] %v5037_v57  ;;  %v538_v57 = vcombine.high %v521_v8, %v6360_v29  ;;  %v636_v12 = vcombine.high %v619_v44, %v6360_v29 }
 0x1fc   : > { %2471 = vrot.lane.b32.xlu1 %v1909_v39, %s3954_s16  ;;  %2505 = vrot.lane.b32.xlu0 %v423_v30, %s3955_s22 }
 0x1fe   : > { %v5047_v62 = vpop.permute.xlu1 %2263  ;;  %v5049_v45 = vpop.permute.xlu0 %2265 }
 0x1ff   : > { %6435 = vst [vmem:[#allocation98_spill] sm:$0xff] %v5047_v62  ;;  %6436 = vst [vmem:[#allocation99_spill] sm:$0xff] %v5049_v45  ;;  %v1795_v45 = vrot.slane %v1781_v43, %v4123_v35 }
 0x200   : > { %2507 = vrot.lane.b32.xlu1 %v521_v8, %s3955_s22  ;;  %2509 = vrot.lane.b32.xlu0 %v619_v44, %s3955_s22 }
 0x202   : > { %v5059_v39 = vpop.permute.xlu1 %2267  ;;  %v5061_v21 = vpop.permute.xlu0 %2269 }
 0x203   : > { %6437 = vst [vmem:[#allocation100_spill] sm:$0xff] %v5059_v39  ;;  %6438 = vst [vmem:[#allocation101_spill] sm:$0xff] %v5061_v21 }
 0x204   : > { %2511 = vrot.lane.b32.xlu1 %v717_v32, %s3955_s22  ;;  %2513 = vrot.lane.b32.xlu0 %v815_v51, %s3955_s22 }
 0x206   : > { %v5071_v11 = vpop.permute.xlu1 %2271  ;;  %v5073_v46 = vpop.permute.xlu0 %2273 }
 0x207   : > { %6439 = vst [vmem:[#allocation102_spill] sm:$0xff] %v5071_v11  ;;  %6440 = vst [vmem:[#allocation103_spill] sm:$0xff] %v5073_v46  ;;  %v1109_v46 = vrot.slane %v1095_v20, %v4123_v35  ;;  %v1403_v20 = vrot.slane %v1389_v25, %v4123_v35  ;;  %v1879_v25 = vcombine.high %v4953_v55, %v6360_v29 }
 0x208   : > { %2515 = vrot.lane.b32.xlu1 %v913_v47, %s3955_s22  ;;  %2517 = vrot.lane.b32.xlu0 %v1011_v0, %s3955_s22  ;;  %v440_v55 = vcombine.high %v423_v30, %v6360_v29 }
 0x209   : > { %v1893_v62 = vrot.slane %v1879_v25, %v4123_v35 }
 0x20a   : > { %v5083_v21 = vpop.permute.xlu1 %2275  ;;  %v5085_v2 = vpop.permute.xlu0 %2277 }
 0x20b   : > { %6441 = vst [vmem:[#allocation104_spill] sm:$0xff] %v5083_v21  ;;  %v1305_v21 = vrot.slane %v1291_v23, %v4123_v35  ;;  %v1599_v23 = vrot.slane %v1585_v36, %v4123_v35 }
 0x20c   : > { %2519 = vrot.lane.b32.xlu1 %v1109_v46, %s3955_s22  ;;  %2521 = vrot.lane.b32.xlu0 %v1207_v17, %s3955_s22 }
 0x20e   : > { %v5095_v11 = vpop.permute.xlu1 %2279  ;;  %v5097_v19 = vpop.permute.xlu0 %2313 }
 0x210   : > { %2523 = vrot.lane.b32.xlu1 %v1305_v21, %s3955_s22  ;;  %2525 = vrot.lane.b32.xlu0 %v1403_v20, %s3955_s22 }
 0x212   : > { %v5107_v39 = vpop.permute.xlu1 %2315  ;;  %v5109_v53 = vpop.permute.xlu0 %2317 }
 0x214   : > { %2527 = vrot.lane.b32.xlu1 %v1501_v52, %s3955_s22  ;;  %2529 = vrot.lane.b32.xlu0 %v1599_v23, %s3955_s22 }
 0x216   : > { %v5117_v13 = vpop.permute.xlu1 %2319  ;;  %v5119_v4 = vpop.permute.xlu0 %2321 }
 0x217   : > { %6442 = vst [vmem:[#allocation105_spill] sm:$0xff] %v5117_v13  ;;  %6443 = vst [vmem:[#allocation106_spill] sm:$0xff] %v5119_v4 }
 0x218   : > { %2531 = vrot.lane.b32.xlu1 %v1697_v50, %s3955_s22  ;;  %2533 = vrot.lane.b32.xlu0 %v1795_v45, %s3955_s22 }
 0x21a   : > { %v5125_v60 = vpop.permute.xlu1 %2323  ;;  %v5127_v36 = vpop.permute.xlu0 %2325 }
 0x21b   : > { %6444 = vst [vmem:[#allocation107_spill] sm:$0xff] %v5125_v60  ;;  %6445 = vst [vmem:[#allocation108_spill] sm:$0xff] %v5127_v36  ;;  %v734_v36 = vcombine.high %v717_v32, %v6360_v29 }
 0x21c   : > { %2535 = vrot.lane.b32.xlu1 %v1893_v62, %s3955_s22  ;;  %2569 = vrot.lane.b32.xlu0 %v440_v55, %s3956_s21  ;;  %v832_v55 = vcombine.high %v815_v51, %v6360_v29  ;;  %v1126_v51 = vcombine.high %v1109_v46, %v6360_v29  ;;  %v394_v46 = vcombine.high %v4145_v42, %v6360_v29 }
 0x21d   : > { %v590_v42 = vcombine.high %v4331_v38, %v6360_v29 }
 0x21e   : > { %v5133_v49 = vpop.permute.xlu1 %2327  ;;  %v5135_v43 = vpop.permute.xlu0 %2329 }
 0x21f   : > { %6446 = vst [vmem:[#allocation109_spill] sm:$0xff] %v5133_v49  ;;  %6447 = vst [vmem:[#allocation110_spill] sm:$0xff] %v5135_v43  ;;  %v5204_v38 = vrot.slane %v590_v42, %v4120_v34 }
 0x220   : > { %2571 = vrot.lane.b32.xlu1 %v538_v57, %s3956_s21  ;;  %2573 = vrot.lane.b32.xlu0 %v636_v12, %s3956_s21  ;;  %v930_v57 = vcombine.high %v913_v47, %v6360_v29  ;;  %v1028_v12 = vcombine.high %v1011_v0, %v6360_v29  ;;  %v1322_v0 = vcombine.high %v1305_v21, %v6360_v29 }
 0x221   : > { %v492_v21 = vcombine.high %v4315_v59, %v6360_v29 }
 0x222   : > { %v5141_v25 = vpop.permute.xlu1 %2331  ;;  %v5143_v30 = vpop.permute.xlu0 %2333 }
 0x223   : > { %6448 = vst [vmem:[#allocation111_spill] sm:$0xff] %v5141_v25  ;;  %6449 = vst [vmem:[#allocation112_spill] sm:$0xff] %v5143_v30  ;;  %v5199_v59 = vrot.slane %v492_v21, %v4120_v34 }
 0x224   : > { %2575 = vrot.lane.b32.xlu1 %v734_v36, %s3956_s21  ;;  %2577 = vrot.lane.b32.xlu0 %v832_v55, %s3956_s21  ;;  %v1224_v36 = vcombine.high %v1207_v17, %v6360_v29 }
 0x226   : > { %v5149_v43 = vpop.permute.xlu1 %2335  ;;  %v5151_v8 = vpop.permute.xlu0 %2337 }
 0x227   : > { %6450 = vst [vmem:[#allocation113_spill] sm:$0xff] %v5149_v43  ;;  %6451 = vst [vmem:[#allocation114_spill] sm:$0xff] %v5151_v8 }
 0x228   : > { %2579 = vrot.lane.b32.xlu1 %v930_v57, %s3956_s21  ;;  %2581 = vrot.lane.b32.xlu0 %v1028_v12, %s3956_s21  ;;  %v1420_v57 = vcombine.high %v1403_v20, %v6360_v29  ;;  %v5186_v20 = vrot.slane %v394_v46, %v4120_v34  ;;  %v688_v46 = vcombine.high %v4343_v31, %v6360_v29 }
 0x22a   : > { %v5157_v44 = vpop.permute.xlu1 %2339  ;;  %v5159_v32 = vpop.permute.xlu0 %2341  ;;  %v5221_v31 = vrot.slane %v688_v46, %v4120_v34  ;;  %v5240_v46 = vrot.slane %v5204_v38, %v4123_v35 }
 0x22b   : > { %6452 = vst [vmem:[#allocation115_spill] sm:$0xff] %v5157_v44  ;;  %v1178_v44 = vcombine.high %v4395_v14, %v6360_v29  ;;  %v1276_v14 = vcombine.high %v4403_v26, %v6360_v29 }
 0x22c   : > { %2583 = vrot.lane.b32.xlu1 %v1126_v51, %s3956_s21  ;;  %2585 = vrot.lane.b32.xlu0 %v1224_v36, %s3956_s21  ;;  %v1518_v51 = vcombine.high %v1501_v52, %v6360_v29  ;;  %v1616_v36 = vcombine.high %v1599_v23, %v6360_v29  ;;  %v1714_v52 = vcombine.high %v1697_v50, %v6360_v29 }
 0x22d   : > { %v1812_v23 = vcombine.high %v1795_v45, %v6360_v29  ;;  %v1910_v45 = vcombine.high %v1893_v62, %v6360_v29  ;;  %v982_v62 = vcombine.high %v4379_v63, %v6360_v29  ;;  %v1080_v63 = vcombine.high %v4387_v6, %v6360_v29 }
 0x22e   : > { %v5165_v55 = vpop.permute.xlu1 %2343  ;;  %v5167_v47 = vpop.permute.xlu0 %2377  ;;  %v5262_v30 = vrot.slane %v5221_v31, %v4123_v35  ;;  %v5293_v26 = vrot.slane %v1276_v14, %v4120_v34 }
 0x22f   : > { %v5273_v6 = vrot.slane %v1080_v63, %v4120_v34 }
 0x230   : > { %2587 = vrot.lane.b32.xlu1 %v1322_v0, %s3956_s21  ;;  %2589 = vrot.lane.b32.xlu0 %v1420_v57, %s3956_s21  ;;  %v1313_v60 = vrot.slane %v5293_v26, %v4123_v35 }
 0x231   : > { %v1117_v49 = vrot.slane %v5273_v6, %v4123_v35 }
 0x232   : > { %v5175_v17 = vpop.permute.xlu1 %2379  ;;  %v5177_v12 = vpop.permute.xlu0 %2381 }
 0x233   : > { %6453 = vst [vmem:[#allocation116_spill] sm:$0xff] %v5177_v12 }
 0x234   : > { %2591 = vrot.lane.b32.xlu1 %v1518_v51, %s3956_s21  ;;  %2593 = vrot.lane.b32.xlu0 %v1616_v36, %s3956_s21  ;;  %v786_v51 = vcombine.high %v4358_v7, %v6360_v29  ;;  %v884_v7 = vcombine.high %v4368_v27, %v6360_v29 }
 0x236   : > { %v5190_v0 = vpop.permute.xlu1 %2383  ;;  %v5192_v57 = vpop.permute.xlu0 %2385  ;;  %v5226_v21 = vrot.slane %v786_v51, %v4120_v34  ;;  %v5247_v27 = vrot.slane %v884_v7, %v4120_v34  ;;  %v5252_v51 = vrot.slane %v982_v62, %v4120_v34  ;;  %v5278_v62 = vrot.slane %v1178_v44, %v4120_v34 }
 0x237   : > { %6454 = vst [vmem:[#allocation117_spill] sm:$0xff] %v5190_v0  ;;  %6455 = vst [vmem:[#allocation118_spill] sm:$0xff] %v5192_v57 }
 0x238   : > { %2595 = vrot.lane.b32.xlu1 %v1714_v52, %s3956_s21  ;;  %2597 = vrot.lane.b32.xlu0 %v1812_v23, %s3956_s21  ;;  %v5215_v52 = vrot.slane %v5186_v20, %v4123_v35  ;;  %v5266_v7 = vrot.slane %v5226_v21, %v4123_v35  ;;  %v1019_v63 = vrot.slane %v5252_v51, %v4123_v35 }
 0x239   : > { %v1215_v14 = vrot.slane %v5278_v62, %v4123_v35 }
 0x23a   : > { %v5208_v36 = vpop.permute.xlu1 %2387  ;;  %v5210_v50 = vpop.permute.xlu0 %2389 }
 0x23b   : > { %6456 = vst [vmem:[#allocation119_spill] sm:$0xff] %v5208_v36  ;;  %6457 = vst [vmem:[#allocation120_spill] sm:$0xff] %v5210_v50 }
 0x23c   : > { %2599 = vrot.lane.b32.xlu1 %v1910_v45, %s3956_s21  ;;  %2633 = vrot.lane.b32.xlu0 %v5215_v52, %s3957_s24  ;;  %v5236_v45 = vrot.slane %v5199_v59, %v4123_v35 }
 0x23e   : > { %v5230_v42 = vpop.permute.xlu1 %2391  ;;  %v5232_v23 = vpop.permute.xlu0 %2393 }
 0x23f   : > { %6458 = vst [vmem:[#allocation121_spill] sm:$0xff] %v5230_v42  ;;  %6459 = vst [vmem:[#allocation122_spill] sm:$0xff] %v5232_v23  ;;  %v921_v23 = vrot.slane %v5247_v27, %v4123_v35 }
 0x240   : > { %2635 = vrot.lane.b32.xlu1 %v5236_v45, %s3957_s24  ;;  %2637 = vrot.lane.b32.xlu0 %v5240_v46, %s3957_s24 }
 0x242   : > { %v5256_v8 = vpop.permute.xlu1 %2395  ;;  %v5258_v43 = vpop.permute.xlu0 %2397 }
 0x243   : > { %6460 = vst [vmem:[#allocation123_spill] sm:$0xff] %v5256_v8  ;;  %6461 = vst [vmem:[#allocation124_spill] sm:$0xff] %v5258_v43  ;;  %v1374_v43 = vcombine.high %v4411_v54, %v6360_v29  ;;  %v1472_v54 = vcombine.high %v4421_v15, %v6360_v29 }
 0x244   : > { %2639 = vrot.lane.b32.xlu1 %v5262_v30, %s3957_s24  ;;  %2641 = vrot.lane.b32.xlu0 %v5266_v7, %s3957_s24 }
 0x245   : > { %v5298_v44 = vrot.slane %v1374_v43, %v4120_v34  ;;  %v5313_v15 = vrot.slane %v1472_v54, %v4120_v34 }
 0x246   : > { %v5282_v8 = vpop.permute.xlu1 %2399  ;;  %v5284_v25 = vpop.permute.xlu0 %2401 }
 0x247   : > { %6462 = vst [vmem:[#allocation125_spill] sm:$0xff] %v5282_v8  ;;  %6463 = vst [vmem:[#allocation126_spill] sm:$0xff] %v5284_v25  ;;  %v1570_v25 = vcombine.high %v4446_v22, %v6360_v29  ;;  %v1668_v22 = vcombine.high %v4474_v58, %v6360_v29  ;;  %v1411_v54 = vrot.slane %v5298_v44, %v4123_v35 }
 0x248   : > { %2643 = vrot.lane.b32.xlu1 %v921_v23, %s3957_s24  ;;  %2645 = vrot.lane.b32.xlu0 %v1019_v63, %s3957_s24  ;;  %v5346_v4 = vrot.slane %v5313_v15, %v4123_v35 }
 0x249   : > { %v5318_v43 = vrot.slane %v1570_v25, %v4120_v34  ;;  %v5333_v58 = vrot.slane %v1668_v22, %v4120_v34 }
 0x24a   : > { %v5302_v8 = vpop.permute.xlu1 %2403  ;;  %v5304_v42 = vpop.permute.xlu0 %2405 }
 0x24b   : > { %6464 = vst [vmem:[#allocation127_spill] sm:$0xff] %v5302_v8  ;;  %v1766_v8 = vcombine.high %v4506_v37, %v6360_v29  ;;  %v1864_v37 = vcombine.high %v4528_v61, %v6360_v29  ;;  %v5350_v13 = vrot.slane %v5318_v43, %v4123_v35  ;;  %v5365_v56 = vrot.slane %v5333_v58, %v4123_v35 }
 0x24c   : > { %2647 = vrot.lane.b32.xlu1 %v1117_v49, %s3957_s24  ;;  %2649 = vrot.lane.b32.xlu0 %v1215_v14, %s3957_s24 }
 0x24d   : > { %v5336_v25 = vrot.slane %v1766_v8, %v4120_v34  ;;  %v5357_v61 = vrot.slane %v1864_v37, %v4120_v34 }
 0x24e   : > { %v5322_v50 = vpop.permute.xlu1 %2407  ;;  %v5324_v36 = vpop.permute.xlu0 %2441 }
 0x24f   : > { %v5369_v28 = vrot.slane %v5336_v25, %v4123_v35 }
 0x250   : > { %2651 = vrot.lane.b32.xlu1 %v1313_v60, %s3957_s24  ;;  %2653 = vrot.lane.b32.xlu0 %v1411_v54, %s3957_s24 }
 0x252   : > { %v5340_v57 = vpop.permute.xlu1 %2443  ;;  %v5342_v0 = vpop.permute.xlu0 %2445 }
 0x253   : > { %6465 = vst [vmem:[#allocation128_spill] sm:$0xff] %v5340_v57  ;;  %6466 = vst [vmem:[#allocation129_spill] sm:$0xff] %v5342_v0 }
 0x254   : > { %2655 = vrot.lane.b32.xlu1 %v5346_v4, %s3957_s24  ;;  %2657 = vrot.lane.b32.xlu0 %v5350_v13, %s3957_s24 }
 0x256   : > { %v5359_v8 = vpop.permute.xlu1 %2447  ;;  %v5361_v22 = vpop.permute.xlu0 %2449 }
 0x257   : > { %6467 = vst [vmem:[#allocation130_spill] sm:$0xff] %v5359_v8  ;;  %6468 = vst [vmem:[#allocation131_spill] sm:$0xff] %v5361_v22  ;;  %v5381_v22 = vrot.slane %v5357_v61, %v4123_v35  ;;  %v441_v8 = vcombine.high %v5215_v52, %v6360_v29 }
 0x258   : > { %2659 = vrot.lane.b32.xlu1 %v5365_v56, %s3957_s24  ;;  %2661 = vrot.lane.b32.xlu0 %v5369_v28, %s3957_s24 }
 0x25a   : > { %v5375_v37 = vpop.permute.xlu1 %2451  ;;  %v5377_v34 = vpop.permute.xlu0 %2453 }
 0x25b   : > { %6469 = vst [vmem:[#allocation132_spill] sm:$0xff] %v5375_v37  ;;  %6470 = vst [vmem:[#allocation133_spill] sm:$0xff] %v5377_v34  ;;  %v539_v34 = vcombine.high %v5236_v45, %v6360_v29  ;;  %v637_v37 = vcombine.high %v5240_v46, %v6360_v29 }
 0x25c   : > { %2663 = vrot.lane.b32.xlu1 %v5381_v22, %s3957_s24  ;;  %2697 = vrot.lane.b32.xlu0 %v441_v8, %s3958_s26  ;;  %v735_v8 = vcombine.high %v5262_v30, %v6360_v29 }
 0x25e   : > { %v5388_v0 = vpop.permute.xlu1 %2455  ;;  %v5390_v57 = vpop.permute.xlu0 %2457 }
 0x25f   : > { %6471 = vst [vmem:[#allocation134_spill] sm:$0xff] %v5388_v0  ;;  %6472 = vst [vmem:[#allocation135_spill] sm:$0xff] %v5390_v57  ;;  %v833_v57 = vcombine.high %v5266_v7, %v6360_v29  ;;  %v1127_v7 = vcombine.high %v1117_v49, %v6360_v29  ;;  %v1323_v49 = vcombine.high %v1313_v60, %v6360_v29  ;;  %v6504_v0 = vld [vmem:[#allocation14_spill] sm:$0xff] }
 0x260   : > { %2699 = vrot.lane.b32.xlu1 %v539_v34, %s3958_s26  ;;  %2701 = vrot.lane.b32.xlu0 %v637_v37, %s3958_s26  ;;  %v931_v34 = vcombine.high %v921_v23, %v6360_v29  ;;  %v1029_v37 = vcombine.high %v1019_v63, %v6360_v29  ;;  %v424_v23 = vcombine.high %v5186_v20, %v6360_v29 }
 0x261   : > { %v522_v63 = vcombine.high %v5199_v59, %v6360_v29  ;;  %v816_v20 = vcombine.high %v5226_v21, %v6360_v29  ;;  %v914_v59 = vcombine.high %v5247_v27, %v6360_v29  ;;  %v1208_v60 = vcombine.high %v5278_v62, %v6360_v29 }
 0x262   : > { %v5398_v52 = vpop.permute.xlu1 %2459  ;;  %v5400_v12 = vpop.permute.xlu0 %2461  ;;  %v1502_v21 = vcombine.high %v5313_v15, %v6360_v29  ;;  %v1600_v27 = vcombine.high %v5318_v43, %v6360_v29  ;;  %v438_v15 = vrot.slane %v424_v23, %v4123_v35  ;;  %v1894_v43 = vcombine.high %v5357_v61, %v6360_v29 }
 0x263   : > { %6473 = vst [vmem:[#allocation136_spill] sm:$0xff] %v5398_v52  ;;  %6474 = vst [vmem:[#allocation137_spill] sm:$0xff] %v5400_v12  ;;  %v6497_v52 = vld [vmem:[#allocation10_spill] sm:$0xff] }
 0x264   : > { %2703 = vrot.lane.b32.xlu1 %v735_v8, %s3958_s26  ;;  %2705 = vrot.lane.b32.xlu0 %v833_v57, %s3958_s26  ;;  %v1225_v57 = vcombine.high %v1215_v14, %v6360_v29  ;;  %v620_v8 = vcombine.high %v5204_v38, %v6360_v29  ;;  %v1421_v14 = vcombine.high %v1411_v54, %v6360_v29 }
 0x265   : > { %v1012_v38 = vcombine.high %v5252_v51, %v6360_v29  ;;  %v1306_v54 = vcombine.high %v5293_v26, %v6360_v29  ;;  %v1698_v51 = vcombine.high %v5333_v58, %v6360_v29  ;;  %v5474_v58 = vrot.slane %v522_v63, %v4123_v35 }
 0x266   : > { %v5408_v45 = vpop.permute.xlu1 %2463  ;;  %v5410_v46 = vpop.permute.xlu0 %2465  ;;  %v5497_v63 = vrot.slane %v1208_v60, %v4123_v35  ;;  %v5517_v60 = vcombine.high %v438_v15, %v6360_v29 }
 0x267   : > { %6475 = vst [vmem:[#allocation138_spill] sm:$0xff] %v5408_v45  ;;  %6476 = vst [vmem:[#allocation139_spill] sm:$0xff] %v5410_v46  ;;  %v5491_v61 = vrot.slane %v1012_v38, %v4123_v35  ;;  %v1813_v38 = vcombine.high %v5369_v28, %v6360_v29  ;;  %v6489_v46 = vld [vmem:[#allocation7_spill] sm:$0xff] }
 0x268   : > { %2707 = vrot.lane.b32.xlu1 %v931_v34, %s3958_s26  ;;  %2709 = vrot.lane.b32.xlu0 %v1029_v37, %s3958_s26  ;;  %6480 = vst [vmem:[#allocation143_spill] sm:$0xff] %v5517_v60 }
 0x26a   : > { %v5416_v30 = vpop.permute.xlu1 %2467  ;;  %v5418_v12 = vpop.permute.xlu0 %2469 }
 0x26b   : > { %6477 = vst [vmem:[#allocation140_spill] sm:$0xff] %v5416_v30  ;;  %v2875_v30 = vsel %vm2873_vm0, %v4139_v40, %v4558_v3  ;;  %v6491_v40 = vld [vmem:[#allocation8_spill] sm:$0xff] }
 0x26c   : > { %2711 = vrot.lane.b32.xlu1 %v1127_v7, %s3958_s26  ;;  %2713 = vrot.lane.b32.xlu0 %v1225_v57, %s3958_s26  ;;  %v718_v7 = vcombine.high %v5221_v31, %v6360_v29  ;;  %v1110_v57 = vcombine.high %v5273_v6, %v6360_v29  ;;  %v1404_v31 = vcombine.high %v5298_v44, %v6360_v29 }
 0x26d   : > { %v1796_v6 = vcombine.high %v5336_v25, %v6360_v29  ;;  %v1617_v44 = vcombine.high %v5350_v13, %v6360_v29  ;;  %v5477_v25 = vrot.slane %v620_v8, %v4123_v35  ;;  %v5485_v13 = vrot.slane %v816_v20, %v4123_v35 }
 0x26e   : > { %v5430_v34 = vpop.permute.xlu1 %2471  ;;  %v5432_v37 = vpop.permute.xlu0 %2505  ;;  %v5494_v23 = vrot.slane %v1110_v57, %v4123_v35  ;;  %v5500_v8 = vrot.slane %v1306_v54, %v4123_v35  ;;  %v5514_v57 = vrot.slane %v1502_v21, %v4123_v35  ;;  %v5520_v54 = vrot.slane %v1600_v27, %v4123_v35 }
 0x26f   : > { %v5539_v21 = vrot.slane %v1698_v51, %v4123_v35  ;;  %v5543_v27 = vcombine.high %v5485_v13, %v6360_v29  ;;  %v2876_v51 = vsel %vm2873_vm0, %v4161_v48, %v4560_v24  ;;  %v6498_v24 = vld [vmem:[#allocation11_spill] sm:$0xff] }
 0x270   : > { %2715 = vrot.lane.b32.xlu1 %v1323_v49, %s3958_s26  ;;  %2717 = vrot.lane.b32.xlu0 %v1421_v14, %s3958_s26  ;;  %v1519_v49 = vcombine.high %v5346_v4, %v6360_v29  ;;  %v5480_v14 = vrot.slane %v718_v7, %v4123_v35  ;;  %v5488_v4 = vrot.slane %v914_v59, %v4123_v35 }
 0x271   : > { %v5503_v7 = vrot.slane %v1404_v31, %v4123_v35  ;;  %v1715_v59 = vcombine.high %v5365_v56, %v6360_v29  ;;  %v5524_v31 = vcombine.high %v5474_v58, %v6360_v29  ;;  %v1911_v56 = vcombine.high %v5381_v22, %v6360_v29  ;;  %6484 = vst [vmem:[#allocation147_spill] sm:$0xff] %v5539_v21 }
 0x272   : > { %v5462_v62 = vpop.permute.xlu1 %2507  ;;  %v5464_v26 = vpop.permute.xlu0 %2509  ;;  %v5532_v28 = vcombine.high %v5480_v14, %v6360_v29  ;;  %6485 = vst [vmem:[#allocation148_spill] sm:$0xff] %v5543_v27  ;;  %v5555_v22 = vrot.slane %v1894_v43, %v4123_v35  ;;  %v6490_v27 = vld [vmem:[#allocation21_spill] sm:$0xff]  ;;  %v6496_v43 = vld [vmem:[#allocation23_spill] sm:$0xff] }
 0x273   : > { %6481 = vst [vmem:[#allocation144_spill] sm:$0xff] %v5524_v31  ;;  %v2878_v3 = vsel %vm2873_vm0, %v6491_v40, %v6490_v27  ;;  %v2880_v48 = vsel %vm2873_vm0, %v6497_v52, %v6496_v43  ;;  %v6501_v40 = vld [vmem:[#allocation25_spill] sm:$0xff]  ;;  %v6507_v43 = vld [vmem:[#allocation28_spill] sm:$0xff] }
 0x274   : > { %2719 = vrot.lane.b32.xlu1 %v1519_v49, %s3958_s26  ;;  %2721 = vrot.lane.b32.xlu0 %v1617_v44, %s3958_s26  ;;  %v5528_v44 = vcombine.high %v5477_v25, %v6360_v29  ;;  %6483 = vst [vmem:[#allocation146_spill] sm:$0xff] %v5532_v28  ;;  %6487 = vst [vmem:[#allocation150_spill] sm:$0xff] %v5555_v22  ;;  %v6488_v29 = vld [vmem:[#allocation20_spill] sm:$0xff]  ;;  %v6492_v28 = vld [vmem:[#allocation22_spill] sm:$0xff] }
 0x275   : > { %v2877_v45 = vsel %vm2873_vm0, %v6489_v46, %v6488_v29  ;;  %v2881_v29 = vsel %vm2873_vm0, %v6498_v24, %v4593_v33  ;;  %v6499_v46 = vld [vmem:[#allocation24_spill] sm:$0xff]  ;;  %v6502_v31 = vld [vmem:[#allocation13_spill] sm:$0xff]  ;;  %v6505_v22 = vld [vmem:[#allocation27_spill] sm:$0xff] }
 0x276   : > { %v5505_v20 = vpop.permute.xlu1 %2511  ;;  %v5507_v49 = vpop.permute.xlu0 %2513  ;;  %6482 = vst [vmem:[#allocation145_spill] sm:$0xff] %v5528_v44  ;;  %v6500_v44 = vld [vmem:[#allocation12_spill] sm:$0xff] }
 0x277   : > { %6478 = vst [vmem:[#allocation141_spill] sm:$0xff] %v5505_v20  ;;  %6479 = vst [vmem:[#allocation142_spill] sm:$0xff] %v5507_v49  ;;  %v2882_v27 = vsel %vm2873_vm0, %v6500_v44, %v6499_v46  ;;  %v6509_v44 = vld [vmem:[#allocation29_spill] sm:$0xff]  ;;  %v6511_v46 = vld [vmem:[#allocation30_spill] sm:$0xff] }
 0x278   : > { %2723 = vrot.lane.b32.xlu1 %v1715_v59, %s3958_s26  ;;  %2725 = vrot.lane.b32.xlu0 %v1813_v38, %s3958_s26  ;;  %v2874_v59 = vsel %vm2873_vm0, %v4143_v41, %v4542_v5  ;;  %v5552_v38 = vrot.slane %v1796_v6, %v4123_v35  ;;  %v6493_v41 = vld [vmem:[#allocation9_spill] sm:$0xff]  ;;  %v6518_v49 = vld [vmem:[#allocation35_spill] sm:$0xff] }
 0x279   : > { %v2879_v5 = vsel %vm2873_vm0, %v6493_v41, %v6492_v28  ;;  %v2883_v28 = vsel %vm2873_vm0, %v6502_v31, %v6501_v40  ;;  %v6503_v41 = vld [vmem:[#allocation26_spill] sm:$0xff]  ;;  %v6510_v31 = vld [vmem:[#allocation17_spill] sm:$0xff] }
 0x27a   : > { %6486 = vst [vmem:[#allocation149_spill] sm:$0xff] %v5552_v38  ;;  %v5569_v6 = vpop.permute.xlu1 %2515  ;;  %v5571_v35 = vpop.permute.xlu0 %2517  ;;  %v2884_v60 = vsel %vm2873_vm0, %v6504_v0, %v6503_v41  ;;  %v2887_v24 = vsel %vm2873_vm0, %v6510_v31, %v6509_v44  ;;  %v6512_v0 = vld [vmem:[#allocation18_spill] sm:$0xff]  ;;  %v6513_v41 = vld [vmem:[#allocation31_spill] sm:$0xff]  ;;  %v6515_v38 = vld [vmem:[#allocation32_spill] sm:$0xff]  ;;  %v2894_v44 = vsel %vm2890_vm1, %v2877_v45, %v6518_v49 }
 0x27b   : > { %6494 = vst [vmem:[#allocation20_spill] sm:$0xff] %v5569_v6  ;;  %6495 = vst [vmem:[#allocation7_spill] sm:$0xff] %v5571_v35  ;;  %v6506_v35 = vld [vmem:[#allocation15_spill] sm:$0xff]  ;;  %v6508_v6 = vld [vmem:[#allocation16_spill] sm:$0xff]  ;;  %v2888_v40 = vsel %vm2873_vm0, %v6512_v0, %v6511_v46 }
 0x27c   : > { %v2885_v52 = vsel %vm2873_vm0, %v6506_v35, %v6505_v22  ;;  %v2886_v33 = vsel %vm2873_vm0, %v6508_v6, %v6507_v43  ;;  %2727 = vrot.lane.b32.xlu1 %v1911_v56, %s3958_s26  ;;  %2761 = vrot.lane.b32.xlu0 %v438_v15, %s3959_s5  ;;  %v6514_v22 = vld [vmem:[#allocation19_spill] sm:$0xff]  ;;  %v2891_v6 = vsel %vm2890_vm1, %v2874_v59, %v6515_v38  ;;  %v6516_v56 = vld [vmem:[#allocation33_spill] sm:$0xff]  ;;  %v6517_v15 = vld [vmem:[#allocation34_spill] sm:$0xff] }
 0x27d   : > { %v2889_v35 = vsel %vm2873_vm0, %v6514_v22, %v6513_v41  ;;  %v2892_v43 = vsel %vm2890_vm1, %v2875_v30, %v6516_v56  ;;  %v2893_v21 = vsel %vm2890_vm1, %v2876_v51, %v6517_v15  ;;  %v6519_v31 = vld [vmem:[#allocation36_spill] sm:$0xff]  ;;  %v6522_v41 = vld [vmem:[#allocation37_spill] sm:$0xff]  ;;  %v6523_v38 = vld [vmem:[#allocation38_spill] sm:$0xff]  ;;  %vm3281_vm0 = vcmask 261120  }
 0x27e   : > { %v2895_v46 = vsel %vm2890_vm1, %v2878_v3, %v6519_v31  ;;  %v5615_v0 = vpop.permute.xlu1 %2519  ;;  %v5617_v20 = vpop.permute.xlu0 %2521  ;;  %v2896_v59 = vsel %vm2890_vm1, %v2879_v5, %v6522_v41  ;;  %v2897_v22 = vsel %vm2890_vm1, %v2880_v48, %v6523_v38  ;;  %v6524_v30 = vld [vmem:[#allocation39_spill] sm:$0xff]  ;;  %v6525_v51 = vld [vmem:[#allocation40_spill] sm:$0xff]  ;;  %v6526_v45 = vld [vmem:[#allocation41_spill] sm:$0xff] }
 0x27f   : > { %6520 = vst [vmem:[#allocation21_spill] sm:$0xff] %v5615_v0  ;;  %6521 = vst [vmem:[#allocation8_spill] sm:$0xff] %v5617_v20  ;;  %v2898_v56 = vsel %vm2890_vm1, %v2881_v29, %v6524_v30  ;;  %v2899_v15 = vsel %vm2890_vm1, %v2882_v27, %v6525_v51  ;;  %v2900_v49 = vsel %vm2890_vm1, %v2883_v28, %v6526_v45  ;;  %v6527_v3 = vld [vmem:[#allocation42_spill] sm:$0xff]  ;;  %v6528_v0 = vld [vmem:[#allocation43_spill] sm:$0xff] }
 0x280   : > { %v2901_v31 = vsel %vm2890_vm1, %v2884_v60, %v6527_v3  ;;  %v2902_v20 = vsel %vm2890_vm1, %v2885_v52, %v6528_v0  ;;  %2763 = vrot.lane.b32.xlu1 %v5474_v58, %s3959_s5  ;;  %2765 = vrot.lane.b32.xlu0 %v5477_v25, %s3959_s5  ;;  %v6529_v5 = vld [vmem:[#allocation44_spill] sm:$0xff]  ;;  %v6530_v29 = vld [vmem:[#allocation45_spill] sm:$0xff]  ;;  %v6531_v28 = vld [vmem:[#allocation46_spill] sm:$0xff] }
 0x281   : > { %v2903_v48 = vsel %vm2890_vm1, %v2886_v33, %v6529_v5  ;;  %v2904_v27 = vsel %vm2890_vm1, %v2887_v24, %v6530_v29  ;;  %v2905_v41 = vsel %vm2890_vm1, %v2888_v40, %v6531_v28  ;;  %v6532_v60 = vld [vmem:[#allocation47_spill] sm:$0xff]  ;;  %v6533_v52 = vld [vmem:[#allocation48_spill] sm:$0xff]  ;;  %v6534_v30 = vld [vmem:[#allocation49_spill] sm:$0xff] }
 0x282   : > { %v2906_v38 = vsel %vm2890_vm1, %v2889_v35, %v6532_v60  ;;  %v2908_v0 = vsel %vm2907_vm2, %v2891_v6, %v6533_v52  ;;  %v2909_v58 = vsel %vm2907_vm2, %v2892_v43, %v6534_v30  ;;  %v6535_v51 = vld [vmem:[#allocation50_spill] sm:$0xff]  ;;  %v6536_v45 = vld [vmem:[#allocation51_spill] sm:$0xff]  ;;  %v5653_v3 = vpop.permute.xlu1 %2523  ;;  %v5655_v24 = vpop.permute.xlu0 %2525  ;;  %v6537_v40 = vld [vmem:[#allocation52_spill] sm:$0xff]  ;;  %vm3286_vm1 = vcmask 269568  }
 0x283   : > { %v2910_v25 = vsel %vm2907_vm2, %v2893_v21, %v6535_v51  ;;  %v2911_v33 = vsel %vm2907_vm2, %v2894_v44, %v6536_v45  ;;  %v2912_v5 = vsel %vm2907_vm2, %v2895_v46, %v6537_v40  ;;  %v6538_v35 = vld [vmem:[#allocation53_spill] sm:$0xff]  ;;  %v6539_v6 = vld [vmem:[#allocation54_spill] sm:$0xff]  ;;  %v6540_v43 = vld [vmem:[#allocation55_spill] sm:$0xff] }
 0x284   : > { %v2913_v29 = vsel %vm2907_vm2, %v2896_v59, %v6538_v35  ;;  %v2914_v28 = vsel %vm2907_vm2, %v2897_v22, %v6539_v6  ;;  %v2915_v60 = vsel %vm2907_vm2, %v2898_v56, %v6540_v43  ;;  %v6541_v21 = vld [vmem:[#allocation56_spill] sm:$0xff]  ;;  %v6542_v44 = vld [vmem:[#allocation57_spill] sm:$0xff]  ;;  %v6543_v51 = vld [vmem:[#allocation62_spill] sm:$0xff]  ;;  %2767 = vrot.lane.b32.xlu1 %v5480_v14, %s3959_s5  ;;  %2769 = vrot.lane.b32.xlu0 %v5485_v13, %s3959_s5 }
 0x285   : > { %v2916_v52 = vsel %vm2907_vm2, %v2899_v15, %v6541_v21  ;;  %v5669_v30 = vsel %vm2907_vm2, %v2900_v49, %v6542_v44  ;;  %v2922_v45 = vsel %vm2907_vm2, %v2905_v41, %v6543_v51  ;;  %v6544_v46 = vld [vmem:[#allocation58_spill] sm:$0xff]  ;;  %v6545_v22 = vld [vmem:[#allocation59_spill] sm:$0xff]  ;;  %v6546_v15 = vld [vmem:[#allocation60_spill] sm:$0xff] }
 0x286   : > { %v5679_v59 = vsel %vm2907_vm2, %v2901_v31, %v6544_v46  ;;  %v5683_v56 = vsel %vm2907_vm2, %v2902_v20, %v6545_v22  ;;  %v5687_v49 = vsel %vm2907_vm2, %v2903_v48, %v6546_v15  ;;  %v6547_v41 = vld [vmem:[#allocation78_spill] sm:$0xff]  ;;  %v6548_v35 = vld [vmem:[#allocation61_spill] sm:$0xff]  ;;  %v6549_v13 = vld [vmem:[#allocation63_spill] sm:$0xff]  ;;  %v5701_v21 = vpop.permute.xlu1 %2527  ;;  %v5703_v48 = vpop.permute.xlu0 %2529 }
 0x287   : > { %v2939_v40 = vsel %vm2924_vm3, %v2922_v45, %v6547_v41  ;;  %v5693_v14 = vsel %vm2907_vm2, %v2904_v27, %v6548_v35  ;;  %v2923_v6 = vsel %vm2907_vm2, %v2906_v38, %v6549_v13  ;;  %v6550_v31 = vld [vmem:[#allocation64_spill] sm:$0xff]  ;;  %v6551_v44 = vld [vmem:[#allocation65_spill] sm:$0xff]  ;;  %v6552_v45 = vld [vmem:[#allocation66_spill] sm:$0xff] }
 0x288   : > { %v2925_v43 = vsel %vm2924_vm3, %v2908_v0, %v6550_v31  ;;  %v2956_v20 = vsel %vm2941_vm4, %v2939_v40, %v4999_v9  ;;  %v2926_v51 = vsel %vm2924_vm3, %v2909_v58, %v6551_v44  ;;  %v2927_v27 = vsel %vm2924_vm3, %v2910_v25, %v6552_v45  ;;  %v6553_v46 = vld [vmem:[#allocation67_spill] sm:$0xff]  ;;  %v6554_v0 = vld [vmem:[#allocation68_spill] sm:$0xff]  ;;  %v6555_v9 = vld [vmem:[#allocation69_spill] sm:$0xff]  ;;  %2771 = vrot.lane.b32.xlu1 %v5488_v4, %s3959_s5 }
 0x289   : > { %v2928_v22 = vsel %vm2924_vm3, %v2911_v33, %v6553_v46  ;;  %v2973_v38 = vsel %vm2958_vm5, %v2956_v20, %v5085_v2  ;;  %v2929_v15 = vsel %vm2924_vm3, %v2912_v5, %v6554_v0  ;;  %v5717_v41 = vsel %vm2924_vm3, %v2913_v29, %v6555_v9  ;;  %2773 = vrot.lane.b32.xlu0 %v5491_v61, %s3959_s5  ;;  %v6556_v58 = vld [vmem:[#allocation79_spill] sm:$0xff]  ;;  %v6557_v25 = vld [vmem:[#allocation80_spill] sm:$0xff]  ;;  %v6558_v31 = vld [vmem:[#allocation70_spill] sm:$0xff] }
 0x28a   : > { %v2990_v40 = vsel %vm2975_vm6, %v2973_v38, %v5159_v32  ;;  %v2940_v2 = vsel %vm2924_vm3, %v2923_v6, %v6556_v58  ;;  %v2942_v33 = vsel %vm2941_vm4, %v2925_v43, %v6557_v25  ;;  %v5737_v13 = vpop.permute.xlu1 %2531  ;;  %v2534_v6 = vpop.permute.xlu0 %2533  ;;  %v2931_v43 = vsel %vm2924_vm3, %v2914_v28, %v6558_v31  ;;  %v6561_v28 = vld [vmem:[#allocation82_spill] sm:$0xff]  ;;  %v6563_v58 = vld [vmem:[#allocation116_spill] sm:$0xff] }
 0x28b   : > { %v3007_v5 = vsel %vm2992_vm7, %v2990_v40, %v5304_v42  ;;  %v2957_v32 = vsel %vm2941_vm4, %v2940_v2, %v5005_v1  ;;  %v2959_v29 = vsel %vm2958_vm5, %v2942_v33, %v5007_v18  ;;  %v6559_v18 = vld [vmem:[#allocation71_spill] sm:$0xff]  ;;  %v6565_v25 = vld [vmem:[#allocation84_spill] sm:$0xff] }
 0x28c   : > { %v3024_v35 = vsel %vm3009_vm8, %v3007_v5, %v5418_v12  ;;  %v2974_v42 = vsel %vm2958_vm5, %v2957_v32, %v5095_v11  ;;  %v2976_v20 = vsel %vm2975_vm6, %v2959_v29, %v5097_v19  ;;  %v5750_v44 = vsel %vm2924_vm3, %v2915_v60, %v6559_v18  ;;  %2775 = vrot.lane.b32.xlu1 %v5494_v23, %s3959_s5  ;;  %v6560_v11 = vld [vmem:[#allocation81_spill] sm:$0xff]  ;;  %v6566_v5 = vld [vmem:[#allocation128_spill] sm:$0xff]  ;;  %v6568_v29 = vld [vmem:[#allocation94_spill] sm:$0xff] }
 0x28d   : > { %v5746_v1 = vsel %vm3026_vm9, %v3024_v35, %v2534_v6  ;;  %v2991_v12 = vsel %vm2975_vm6, %v2974_v42, %v5165_v55  ;;  %v2993_v45 = vsel %vm2992_vm7, %v2976_v20, %v5167_v47  ;;  %2777 = vrot.lane.b32.xlu0 %v5497_v63, %s3959_s5  ;;  %v2943_v19 = vsel %vm2941_vm4, %v2926_v51, %v6560_v11  ;;  %v6567_v32 = vld [vmem:[#allocation129_spill] sm:$0xff]  ;;  %v6569_v6 = vld [vmem:[#allocation95_spill] sm:$0xff] }
 0x28e   : > { %v2944_v60 = vsel %vm2941_vm4, %v2927_v27, %v6561_v28  ;;  %v3008_v46 = vsel %vm2992_vm7, %v2991_v12, %v5322_v50  ;;  %v3010_v55 = vsel %vm3009_vm8, %v2993_v45, %v5324_v36  ;;  %v2960_v47 = vsel %vm2958_vm5, %v2943_v19, %v5013_v10  ;;  %v2536_v9 = vpop.permute.xlu1 %2535  ;;  %v2570_v27 = vpop.permute.xlu0 %2569  ;;  %v6570_v18 = vld [vmem:[#allocation105_spill] sm:$0xff]  ;;  %v6571_v45 = vld [vmem:[#allocation106_spill] sm:$0xff] }
 0x28f   : > { %v2961_v38 = vsel %vm2958_vm5, %v2944_v60, %v5015_v16  ;;  %v3025_v0 = vsel %vm3009_vm8, %v3008_v46, %v5430_v34  ;;  %v3027_v51 = vsel %vm3026_vm9, %v3010_v55, %v5432_v37  ;;  %v2977_v50 = vsel %vm2975_vm6, %v2960_v47, %v5107_v39  ;;  %v6562_v16 = vld [vmem:[#allocation72_spill] sm:$0xff]  ;;  %v6564_v39 = vld [vmem:[#allocation83_spill] sm:$0xff]  ;;  %v6572_v60 = vld [vmem:[#allocation73_spill] sm:$0xff] }
 0x290   : > { %v2978_v36 = vsel %vm2975_vm6, %v2961_v38, %v5109_v53  ;;  %v5781_v40 = vsel %vm3026_vm9, %v3025_v0, %v2536_v9  ;;  %v5784_v10 = vsel %vm3043_vm10, %v3027_v51, %v2570_v27  ;;  %v2933_v34 = vsel %vm2924_vm3, %v2916_v52, %v6562_v16  ;;  %2779 = vrot.lane.b32.xlu1 %v5500_v8, %s3959_s5  ;;  %v6573_v46 = vld [vmem:[#allocation117_spill] sm:$0xff]  ;;  %v6574_v55 = vld [vmem:[#allocation118_spill] sm:$0xff]  ;;  %v6579_v16 = vld [vmem:[#allocation96_spill] sm:$0xff] }
 0x291   : > { %v2994_v37 = vsel %vm2992_vm7, %v2977_v50, %v5175_v17  ;;  %v2995_v2 = vsel %vm2992_vm7, %v2978_v36, %v6563_v58  ;;  %2781 = vrot.lane.b32.xlu0 %v5503_v7, %s3959_s5  ;;  %v2945_v53 = vsel %vm2941_vm4, %v2928_v22, %v6564_v39  ;;  %v2946_v33 = vsel %vm2941_vm4, %v2929_v15, %v6565_v25  ;;  %v6575_v38 = vld [vmem:[#allocation85_spill] sm:$0xff]  ;;  %v6576_v51 = vld [vmem:[#allocation86_spill] sm:$0xff]  ;;  %v6578_v50 = vld [vmem:[#allocation131_spill] sm:$0xff] }
 0x292   : > { %v3011_v52 = vsel %vm3009_vm8, %v2994_v37, %v6566_v5  ;;  %v3012_v17 = vsel %vm3009_vm8, %v2995_v2, %v6567_v32  ;;  %v2962_v35 = vsel %vm2958_vm5, %v2945_v53, %v6568_v29  ;;  %v2963_v31 = vsel %vm2958_vm5, %v2946_v33, %v6569_v6  ;;  %v2572_v20 = vpop.permute.xlu1 %2571  ;;  %v2574_v15 = vpop.permute.xlu0 %2573  ;;  %v6580_v58 = vld [vmem:[#allocation97_spill] sm:$0xff]  ;;  %v6582_v25 = vld [vmem:[#allocation142_spill] sm:$0xff]  ;;  %v6583_v5 = vld [vmem:[#allocation107_spill] sm:$0xff] }
 0x293   : > { %v3028_v42 = vsel %vm3026_vm9, %v3011_v52, %v5462_v62  ;;  %v3029_v22 = vsel %vm3026_vm9, %v3012_v17, %v5464_v26  ;;  %v2979_v12 = vsel %vm2975_vm6, %v2962_v35, %v6570_v18  ;;  %v2980_v11 = vsel %vm2975_vm6, %v2963_v31, %v6571_v45  ;;  %v6581_v39 = vld [vmem:[#allocation141_spill] sm:$0xff]  ;;  %v6584_v32 = vld [vmem:[#allocation108_spill] sm:$0xff]  ;;  %v6585_v6 = vld [vmem:[#allocation74_spill] sm:$0xff] }
 0x294   : > { %v5817_v19 = vsel %vm3043_vm10, %v3028_v42, %v2572_v20  ;;  %v5820_v28 = vsel %vm3043_vm10, %v3029_v22, %v2574_v15  ;;  %v2934_v62 = vsel %vm2924_vm3, %v5669_v30, %v6572_v60  ;;  %v2996_v26 = vsel %vm2992_vm7, %v2979_v12, %v6573_v46  ;;  %2783 = vrot.lane.b32.xlu1 %v5514_v57, %s3959_s5  ;;  %v6577_v30 = vld [vmem:[#allocation130_spill] sm:$0xff]  ;;  %v6586_v42 = vld [vmem:[#allocation119_spill] sm:$0xff]  ;;  %v6587_v20 = vld [vmem:[#allocation120_spill] sm:$0xff] }
 0x295   : > { %v2997_v47 = vsel %vm2992_vm7, %v2980_v11, %v6574_v55  ;;  %2785 = vrot.lane.b32.xlu0 %v5520_v54, %s3959_s5  ;;  %v2947_v0 = vsel %vm2941_vm4, %v5717_v41, %v6575_v38  ;;  %v2948_v9 = vsel %vm2941_vm4, %v2931_v43, %v6576_v51  ;;  %v3013_v27 = vsel %vm3009_vm8, %v2996_v26, %v6577_v30  ;;  %v6588_v18 = vld [vmem:[#allocation147_spill] sm:$0xff]  ;;  %v6589_v12 = vld [vmem:[#allocation149_spill] sm:$0xff]  ;;  %v6591_v60 = vld [vmem:[#allocation88_spill] sm:$0xff] }
 0x296   : > { %v3014_v36 = vsel %vm3009_vm8, %v2997_v47, %v6578_v50  ;;  %v2964_v37 = vsel %vm2958_vm5, %v2947_v0, %v6579_v16  ;;  %v2965_v2 = vsel %vm2958_vm5, %v2948_v9, %v6580_v58  ;;  %v3030_v53 = vsel %vm3026_vm9, %v3013_v27, %v6581_v39  ;;  %v2576_v33 = vpop.permute.xlu1 %2575  ;;  %v2578_v43 = vpop.permute.xlu0 %2577  ;;  %v6590_v45 = vld [vmem:[#allocation87_spill] sm:$0xff]  ;;  %v6593_v55 = vld [vmem:[#allocation133_spill] sm:$0xff]  ;;  %v6594_v38 = vld [vmem:[#allocation98_spill] sm:$0xff] }
 0x297   : > { %v3031_v41 = vsel %vm3026_vm9, %v3014_v36, %v6582_v25  ;;  %v2981_v52 = vsel %vm2975_vm6, %v2964_v37, %v6583_v5  ;;  %v2982_v17 = vsel %vm2975_vm6, %v2965_v2, %v6584_v32  ;;  %v5855_v29 = vsel %vm3043_vm10, %v3030_v53, %v2576_v33  ;;  %v6595_v51 = vld [vmem:[#allocation99_spill] sm:$0xff]  ;;  %v6596_v30 = vld [vmem:[#allocation20_spill] sm:$0xff]  ;;  %v6598_v16 = vld [vmem:[#allocation109_spill] sm:$0xff] }
 0x298   : > { %v5858_v35 = vsel %vm3043_vm10, %v3031_v41, %v2578_v43  ;;  %v2935_v31 = vsel %vm2924_vm3, %v5679_v59, %v6585_v6  ;;  %v2998_v22 = vsel %vm2992_vm7, %v2981_v52, %v6586_v42  ;;  %v2999_v15 = vsel %vm2992_vm7, %v2982_v17, %v6587_v20  ;;  %2787 = vrot.lane.b32.xlu1 %v6588_v18, %s3959_s5  ;;  %v6592_v59 = vld [vmem:[#allocation132_spill] sm:$0xff]  ;;  %v6597_v50 = vld [vmem:[#allocation7_spill] sm:$0xff]  ;;  %v6599_v58 = vld [vmem:[#allocation110_spill] sm:$0xff] }
 0x299   : > { %2789 = vrot.lane.b32.xlu0 %v6589_v12, %s3959_s5  ;;  %v2949_v11 = vsel %vm2941_vm4, %v5750_v44, %v6590_v45  ;;  %v2950_v46 = vsel %vm2941_vm4, %v2933_v34, %v6591_v60  ;;  %v3015_v26 = vsel %vm3009_vm8, %v2998_v22, %v6592_v59  ;;  %v3016_v47 = vsel %vm3009_vm8, %v2999_v15, %v6593_v55  ;;  %v6600_v25 = vld [vmem:[#allocation75_spill] sm:$0xff]  ;;  %v6601_v33 = vld [vmem:[#allocation121_spill] sm:$0xff]  ;;  %v6602_v5 = vld [vmem:[#allocation122_spill] sm:$0xff] }
 0x29a   : > { %v2966_v0 = vsel %vm2958_vm5, %v2949_v11, %v6594_v38  ;;  %v2967_v9 = vsel %vm2958_vm5, %v2950_v46, %v6595_v51  ;;  %v3032_v27 = vsel %vm3026_vm9, %v3015_v26, %v6596_v30  ;;  %v3033_v44 = vsel %vm3026_vm9, %v3016_v47, %v6597_v50  ;;  %v2580_v36 = vpop.permute.xlu1 %2579  ;;  %v2582_v34 = vpop.permute.xlu0 %2581  ;;  %v6603_v32 = vld [vmem:[#allocation150_spill] sm:$0xff]  ;;  %v6604_v17 = vld [vmem:[#allocation143_spill] sm:$0xff]  ;;  %v6605_v6 = vld [vmem:[#allocation89_spill] sm:$0xff] }
 0x29b   : > { %v2983_v37 = vsel %vm2975_vm6, %v2966_v0, %v6598_v16  ;;  %v2984_v2 = vsel %vm2975_vm6, %v2967_v9, %v6599_v58  ;;  %v5893_v39 = vsel %vm3043_vm10, %v3032_v27, %v2580_v36  ;;  %v5896_v53 = vsel %vm3043_vm10, %v3033_v44, %v2582_v34  ;;  %v6606_v22 = vld [vmem:[#allocation90_spill] sm:$0xff]  ;;  %v6608_v45 = vld [vmem:[#allocation135_spill] sm:$0xff]  ;;  %v6609_v60 = vld [vmem:[#allocation100_spill] sm:$0xff] }
 0x29c   : > { %v2936_v41 = vsel %vm2924_vm3, %v5683_v56, %v6600_v25  ;;  %v3000_v43 = vsel %vm2992_vm7, %v2983_v37, %v6601_v33  ;;  %v3001_v52 = vsel %vm2992_vm7, %v2984_v2, %v6602_v5  ;;  %2791 = vrot.lane.b32.xlu1 %v6603_v32, %s3959_s5  ;;  %v2951_v42 = vsel %vm2941_vm4, %v2934_v62, %v6605_v6  ;;  %v6607_v56 = vld [vmem:[#allocation134_spill] sm:$0xff]  ;;  %v6610_v59 = vld [vmem:[#allocation101_spill] sm:$0xff]  ;;  %v6612_v38 = vld [vmem:[#allocation8_spill] sm:$0xff] }
 0x29d   : > { %2825 = vrot.lane.b32.xlu0 %v6604_v17, %s3960_s3  ;;  %v2952_v20 = vsel %vm2941_vm4, %v2935_v31, %v6606_v22  ;;  %v3017_v15 = vsel %vm3009_vm8, %v3000_v43, %v6607_v56  ;;  %v3018_v11 = vsel %vm3009_vm8, %v3001_v52, %v6608_v45  ;;  %v2968_v46 = vsel %vm2958_vm5, %v2951_v42, %v6609_v60  ;;  %v6611_v55 = vld [vmem:[#allocation21_spill] sm:$0xff]  ;;  %v6613_v51 = vld [vmem:[#allocation111_spill] sm:$0xff]  ;;  %v6614_v30 = vld [vmem:[#allocation112_spill] sm:$0xff] }
 0x29e   : > { %v2969_v26 = vsel %vm2958_vm5, %v2952_v20, %v6610_v59  ;;  %v3034_v47 = vsel %vm3026_vm9, %v3017_v15, %v6611_v55  ;;  %v3035_v62 = vsel %vm3026_vm9, %v3018_v11, %v6612_v38  ;;  %v2584_v0 = vpop.permute.xlu1 %2583  ;;  %v2586_v31 = vpop.permute.xlu0 %2585  ;;  %v2985_v9 = vsel %vm2975_vm6, %v2968_v46, %v6613_v51  ;;  %v6615_v36 = vld [vmem:[#allocation76_spill] sm:$0xff]  ;;  %v6616_v16 = vld [vmem:[#allocation123_spill] sm:$0xff]  ;;  %v6619_v33 = vld [vmem:[#allocation145_spill] sm:$0xff] }
 0x29f   : > { %v2986_v27 = vsel %vm2975_vm6, %v2969_v26, %v6614_v30  ;;  %v5930_v50 = vsel %vm3043_vm10, %v3034_v47, %v2584_v0  ;;  %v5933_v44 = vsel %vm3043_vm10, %v3035_v62, %v2586_v31  ;;  %v2937_v34 = vsel %vm2924_vm3, %v5687_v49, %v6615_v36  ;;  %v6617_v58 = vld [vmem:[#allocation124_spill] sm:$0xff]  ;;  %v6620_v43 = vld [vmem:[#allocation91_spill] sm:$0xff]  ;;  %v6623_v42 = vld [vmem:[#allocation137_spill] sm:$0xff] }
 0x2a0   : > { %v3002_v37 = vsel %vm2992_vm7, %v2985_v9, %v6616_v16  ;;  %v3003_v2 = vsel %vm2992_vm7, %v2986_v27, %v6617_v58  ;;  %v6618_v25 = vld [vmem:[#allocation144_spill] sm:$0xff]  ;;  %v2953_v5 = vsel %vm2941_vm4, %v2936_v41, %v6620_v43  ;;  %v6624_v20 = vld [vmem:[#allocation102_spill] sm:$0xff]  ;;  %v6625_v15 = vld [vmem:[#allocation103_spill] sm:$0xff] }
 0x2a1   : > { %2827 = vrot.lane.b32.xlu1 %v6618_v25, %s3960_s3  ;;  %2829 = vrot.lane.b32.xlu0 %v6619_v33, %s3960_s3  ;;  %v6621_v52 = vld [vmem:[#allocation92_spill] sm:$0xff]  ;;  %v3020_v22 = vsel %vm3009_vm8, %v3003_v2, %v6623_v42  ;;  %v2970_v56 = vsel %vm2958_vm5, %v2953_v5, %v6624_v20  ;;  %v6626_v59 = vld [vmem:[#allocation113_spill] sm:$0xff]  ;;  %v6627_v55 = vld [vmem:[#allocation114_spill] sm:$0xff]  ;;  %v6636_v2 = vmov 0.0  }
 0x2a2   : > { %v2954_v17 = vsel %vm2941_vm4, %v2937_v34, %v6621_v52  ;;  %v6622_v6 = vld [vmem:[#allocation136_spill] sm:$0xff]  ;;  %v3037_v41 = vsel %vm3026_vm9, %v3020_v22, %v5655_v24  ;;  %v2588_v60 = vpop.permute.xlu1 %2587  ;;  %v2590_v46 = vpop.permute.xlu0 %2589  ;;  %v2987_v26 = vsel %vm2975_vm6, %v2970_v56, %v6626_v59  ;;  %v6628_v0 = vld [vmem:[#allocation77_spill] sm:$0xff]  ;;  %v6630_v51 = vld [vmem:[#allocation126_spill] sm:$0xff]  ;;  %v932_v25 = vcombine.high %v5488_v4, %v6636_v2 }
 0x2a3   : > { %v3019_v49 = vsel %vm3009_vm8, %v3002_v37, %v6622_v6  ;;  %v2971_v45 = vsel %vm2958_vm5, %v2954_v17, %v6625_v15  ;;  %v5970_v62 = vsel %vm3043_vm10, %v3037_v41, %v2590_v46  ;;  %v6629_v31 = vld [vmem:[#allocation125_spill] sm:$0xff]  ;;  %v6631_v30 = vld [vmem:[#allocation146_spill] sm:$0xff]  ;;  %v6632_v27 = vld [vmem:[#allocation148_spill] sm:$0xff]  ;;  %v1128_v41 = vcombine.high %v5494_v23, %v6636_v2 }
 0x2a4   : > { %v3036_v11 = vsel %vm3026_vm9, %v3019_v49, %v5653_v3  ;;  %v2988_v47 = vsel %vm2975_vm6, %v2971_v45, %v6627_v55  ;;  %v2938_v3 = vsel %vm2924_vm3, %v5693_v14, %v6628_v0  ;;  %v3004_v24 = vsel %vm2992_vm7, %v2987_v26, %v6629_v31  ;;  %v6633_v36 = vld [vmem:[#allocation93_spill] sm:$0xff]  ;;  %v6634_v16 = vld [vmem:[#allocation138_spill] sm:$0xff]  ;;  %v6635_v58 = vld [vmem:[#allocation139_spill] sm:$0xff] }
 0x2a5   : > { %v5967_v38 = vsel %vm3043_vm10, %v3036_v11, %v2588_v60  ;;  %v3005_v9 = vsel %vm2992_vm7, %v2988_v47, %v6630_v51  ;;  %2831 = vrot.lane.b32.xlu1 %v6631_v30, %s3960_s3  ;;  %2833 = vrot.lane.b32.xlu0 %v6632_v27, %s3960_s3  ;;  %v2955_v34 = vsel %vm2941_vm4, %v2938_v3, %v6633_v36  ;;  %v6637_v33 = vld [vmem:[#allocation104_spill] sm:$0xff]  ;;  %v6638_v42 = vld [vmem:[#allocation115_spill] sm:$0xff] }
 0x2a6   : > { %v3021_v37 = vsel %vm3009_vm8, %v3004_v24, %v6634_v16  ;;  %v3022_v14 = vsel %vm3009_vm8, %v3005_v9, %v6635_v58  ;;  %v2972_v43 = vsel %vm2958_vm5, %v2955_v34, %v6637_v33  ;;  %v2592_v17 = vpop.permute.xlu1 %2591  ;;  %v2594_v6 = vpop.permute.xlu0 %2593  ;;  %v1030_v49 = vcombine.high %v5491_v61, %v6636_v2  ;;  %v6639_v56 = vld [vmem:[#allocation127_spill] sm:$0xff] }
 0x2a7   : > { %v3038_v5 = vsel %vm3026_vm9, %v3021_v37, %v5701_v21  ;;  %v3039_v52 = vsel %vm3026_vm9, %v3022_v14, %v5703_v48  ;;  %v2989_v22 = vsel %vm2975_vm6, %v2972_v43, %v6638_v42  ;;  %v6640_v21 = vld [vmem:[#allocation140_spill] sm:$0xff]  ;;  %v1226_v60 = vcombine.high %v5497_v63, %v6636_v2 }
 0x2a8   : > { %v3055_v20 = vsel %vm3043_vm10, %v3038_v5, %v2592_v17  ;;  %v3056_v4 = vsel %vm3043_vm10, %v3039_v52, %v2594_v6  ;;  %v3006_v15 = vsel %vm2992_vm7, %v2989_v22, %v6639_v56  ;;  %v1324_v55 = vcombine.high %v5500_v8, %v6636_v2 }
 0x2a9   : > { %2835 = vrot.lane.b32.xlu1 %v932_v25, %s3960_s3  ;;  %2837 = vrot.lane.b32.xlu0 %v1030_v49, %s3960_s3  ;;  %v3023_v48 = vsel %vm3009_vm8, %v3006_v15, %v6640_v21  ;;  %v1422_v23 = vcombine.high %v5503_v7, %v6636_v2  ;;  %v1520_v3 = vcombine.high %v5514_v57, %v6636_v2 }
 0x2aa   : > { %v3040_v61 = vsel %vm3026_vm9, %v3023_v48, %v5737_v13  ;;  %v2596_v45 = vpop.permute.xlu1 %2595  ;;  %v2598_v11 = vpop.permute.xlu0 %2597  ;;  %v1618_v8 = vcombine.high %v5520_v54, %v6636_v2  ;;  %v1716_v24 = vcombine.high %v6588_v18, %v6636_v2  ;;  %v1814_v57 = vcombine.high %v6589_v12, %v6636_v2 }
 0x2ab   : > { %v3057_v46 = vsel %vm3043_vm10, %v3040_v61, %v2596_v45  ;;  %v3058_v59 = vsel %vm3043_vm10, %v5746_v1, %v2598_v11  ;;  %v1912_v9 = vcombine.high %v6603_v32, %v6636_v2 }
 0x2ad   : > { %2839 = vrot.lane.b32.xlu1 %v1128_v41, %s3960_s3  ;;  %2841 = vrot.lane.b32.xlu0 %v1226_v60, %s3960_s3 }
 0x2ae   : > { %v2600_v26 = vpop.permute.xlu1 %2599  ;;  %v2634_v13 = vpop.permute.xlu0 %2633 }
 0x2af   : > { %v3059_v63 = vsel %vm3043_vm10, %v5781_v40, %v2600_v26  ;;  %v3061_v47 = vsel %vm3060_vm11, %v5784_v10, %v2634_v13 }
 0x2b1   : > { %2843 = vrot.lane.b32.xlu1 %v1324_v55, %s3960_s3  ;;  %2845 = vrot.lane.b32.xlu0 %v1422_v23, %s3960_s3 }
 0x2b2   : > { %v2636_v1 = vpop.permute.xlu1 %2635  ;;  %v2638_v0 = vpop.permute.xlu0 %2637 }
 0x2b3   : > { %v3062_v7 = vsel %vm3060_vm11, %v5817_v19, %v2636_v1  ;;  %v6038_v40 = vsel %vm3060_vm11, %v5820_v28, %v2638_v0 }
 0x2b5   : > { %2847 = vrot.lane.b32.xlu1 %v1520_v3, %s3960_s3  ;;  %2849 = vrot.lane.b32.xlu0 %v1618_v8, %s3960_s3 }
 0x2b6   : > { %v2640_v10 = vpop.permute.xlu1 %2639  ;;  %v2642_v31 = vpop.permute.xlu0 %2641 }
 0x2b7   : > { %v6048_v54 = vsel %vm3060_vm11, %v5855_v29, %v2640_v10  ;;  %v3065_v19 = vsel %vm3060_vm11, %v5858_v35, %v2642_v31 }
 0x2b9   : > { %2851 = vrot.lane.b32.xlu1 %v1716_v24, %s3960_s3  ;;  %2853 = vrot.lane.b32.xlu0 %v1814_v57, %s3960_s3 }
 0x2ba   : > { %v2644_v28 = vpop.permute.xlu1 %2643  ;;  %v2646_v51 = vpop.permute.xlu0 %2645 }
 0x2bb   : > { %v3066_v18 = vsel %vm3060_vm11, %v5893_v39, %v2644_v28  ;;  %v6060_v12 = vsel %vm3060_vm11, %v5896_v53, %v2646_v51 }
 0x2bd   : > { %2855 = vrot.lane.b32.xlu1 %v1912_v9, %s3960_s3 }
 0x2be   : > { %v2648_v29 = vpop.permute.xlu1 %2647  ;;  %v2650_v35 = vpop.permute.xlu0 %2649 }
 0x2bf   : > { %v6065_v30 = vsel %vm3060_vm11, %v5930_v50, %v2648_v29  ;;  %v3069_v27 = vsel %vm3060_vm11, %v5933_v44, %v2650_v35 }
 0x2c2   : > { %v2652_v36 = vpop.permute.xlu1 %2651  ;;  %v2654_v32 = vpop.permute.xlu0 %2653 }
 0x2c3   : > { %v3070_v39 = vsel %vm3060_vm11, %v5967_v38, %v2652_v36  ;;  %v6073_v53 = vsel %vm3060_vm11, %v5970_v62, %v2654_v32 }
 0x2c6   : > { %v2656_v34 = vpop.permute.xlu1 %2655  ;;  %v2658_v16 = vpop.permute.xlu0 %2657 }
 0x2c7   : > { %v6076_v37 = vsel %vm3060_vm11, %v3055_v20, %v2656_v34  ;;  %v3073_v50 = vsel %vm3060_vm11, %v3056_v4, %v2658_v16 }
 0x2ca   : > { %v2660_v58 = vpop.permute.xlu1 %2659  ;;  %v2662_v14 = vpop.permute.xlu0 %2661 }
 0x2cb   : > { %v3074_v44 = vsel %vm3060_vm11, %v3057_v46, %v2660_v58  ;;  %v6081_v25 = vsel %vm3060_vm11, %v3058_v59, %v2662_v14 }
 0x2ce   : > { %v2664_v38 = vpop.permute.xlu1 %2663  ;;  %v2698_v33 = vpop.permute.xlu0 %2697 }
 0x2cf   : > { %v6084_v62 = vsel %vm3060_vm11, %v3059_v63, %v2664_v38  ;;  %v3078_v43 = vsel %vm3077_vm12, %v3061_v47, %v2698_v33 }
 0x2d2   : > { %v2700_v5 = vpop.permute.xlu1 %2699  ;;  %v2702_v52 = vpop.permute.xlu0 %2701 }
 0x2d3   : > { %v3079_v17 = vsel %vm3077_vm12, %v3062_v7, %v2700_v5  ;;  %v3080_v35 = vsel %vm3077_vm12, %v6038_v40, %v2702_v52 }
 0x2d6   : > { %v2704_v6 = vpop.permute.xlu1 %2703  ;;  %v2706_v49 = vpop.permute.xlu0 %2705 }
 0x2d7   : > { %v3082_v42 = vsel %vm3077_vm12, %v3065_v19, %v2706_v49  ;;  %v3081_v58 = vsel %vm3077_vm12, %v6048_v54, %v2704_v6 }
 0x2da   : > { %v2708_v22 = vpop.permute.xlu1 %2707  ;;  %v2710_v20 = vpop.permute.xlu0 %2709 }
 0x2db   : > { %v3083_v4 = vsel %vm3077_vm12, %v3066_v18, %v2708_v22  ;;  %v3084_v54 = vsel %vm3077_vm12, %v6060_v12, %v2710_v20 }
 0x2de   : > { %v6090_v56 = vpop.permute.xlu1 %2711  ;;  %v2714_v15 = vpop.permute.xlu0 %2713 }
 0x2df   : > { %v6093_v21 = vsel %vm3077_vm12, %v3069_v27, %v2714_v15  ;;  %v3085_v12 = vsel %vm3077_vm12, %v6065_v30, %v6090_v56 }
 0x2e2   : > { %v2716_v48 = vpop.permute.xlu1 %2715  ;;  %v6095_v61 = vpop.permute.xlu0 %2717 }
 0x2e3   : > { %v6098_v45 = vsel %vm3077_vm12, %v3070_v39, %v2716_v48 }
 0x2e6   : > { %v6100_v11 = vpop.permute.xlu1 %2719  ;;  %v2722_v41 = vpop.permute.xlu0 %2721 }
 0x2e7   : > { %v6103_v60 = vsel %vm3077_vm12, %v3073_v50, %v2722_v41 }
 0x2ea   : > { %v2724_v46 = vpop.permute.xlu1 %2723  ;;  %v6105_v59 = vpop.permute.xlu0 %2725 }
 0x2eb   : > { %v6108_v26 = vsel %vm3077_vm12, %v3074_v44, %v2724_v46 }
 0x2ee   : > { %v6110_v13 = vpop.permute.xlu1 %2727  ;;  %v2762_v55 = vpop.permute.xlu0 %2761 }
 0x2ef   : > { %v3095_v51 = vsel %vm3094_vm13, %v3078_v43, %v2762_v55 }
 0x2f2   : > { %v2764_v23 = vpop.permute.xlu1 %2763  ;;  %v2766_v63 = vpop.permute.xlu0 %2765 }
 0x2f3   : > { %v3096_v27 = vsel %vm3094_vm13, %v3079_v17, %v2764_v23  ;;  %v3097_v36 = vsel %vm3094_vm13, %v3080_v35, %v2766_v63 }
 0x2f6   : > { %v2768_v47 = vpop.permute.xlu1 %2767  ;;  %v2770_v1 = vpop.permute.xlu0 %2769 }
 0x2f7   : > { %v3098_v44 = vsel %vm3094_vm13, %v3081_v58, %v2768_v47  ;;  %v3099_v40 = vsel %vm3094_vm13, %v3082_v42, %v2770_v1 }
 0x2fa   : > { %v2772_v0 = vpop.permute.xlu1 %2771 }
 0x2fb   : > { %v2774_v3 = vpop.permute.xlu0 %2773  ;;  %v3100_v6 = vsel %vm3094_vm13, %v3083_v4, %v2772_v0  ;;  %v6641_v0 = vld [vmem:[#allocation6_spill] sm:$0xff] }
 0x2fc   : > { %v3101_v42 = vsel %vm3094_vm13, %v3084_v54, %v2774_v3 }
 0x2fe   : > { %v2776_v8 = vpop.permute.xlu1 %2775 }
 0x2ff   : > { %v2778_v7 = vpop.permute.xlu0 %2777  ;;  %v3102_v4 = vsel %vm3094_vm13, %v3085_v12, %v2776_v8 }
 0x302   : > { %v6112_v10 = vpop.permute.xlu1 %2779 }
 0x303   : > { %v6114_v31 = vpop.permute.xlu0 %2781 }
 0x306   : > { %v6116_v24 = vpop.permute.xlu1 %2783 }
 0x307   : > { %v6118_v57 = vpop.permute.xlu0 %2785 }
 0x30a   : > { %v6120_v19 = vpop.permute.xlu1 %2787 }
 0x30b   : > { %v6122_v28 = vpop.permute.xlu0 %2789 }
 0x30e   : > { %v6125_v9 = vpop.permute.xlu1 %2791 }
 0x30f   : > { %v2826_v18 = vpop.permute.xlu0 %2825 }
 0x310   : > { %v3112_v29 = vsel %vm3111_vm14, %v3095_v51, %v2826_v18  ;;  %v3103_v18 = vsel %vm3094_vm13, %v6093_v21, %v2778_v7  ;;  %v3104_v21 = vsel %vm3094_vm13, %v6098_v45, %v6112_v10  ;;  %v3089_v10 = vsel %vm3077_vm12, %v6076_v37, %v6100_v11 }
 0x311   : > { %v3144_v32 = vrot.slane %v3112_v29, 7 }
 0x313   : > { %v2828_v39 = vpop.permute.xlu1 %2827  ;;  %v2830_v34 = vpop.permute.xlu0 %2829  ;;  %v3177_v38 = vsel %vm3176_vm15, %v3112_v29, %v3144_v32 }
 0x314   : > { %v3113_v16 = vsel %vm3111_vm14, %v3096_v27, %v2828_v39  ;;  %v3114_v50 = vsel %vm3111_vm14, %v3097_v36, %v2830_v34 }
 0x315   : > { %v3145_v14 = vrot.slane %v3113_v16, 7  ;;  %v3146_v43 = vrot.slane %v3114_v50, 7 }
 0x317   : > { %v3178_v33 = vsel %vm3176_vm15, %v3113_v16, %v3145_v14  ;;  %v2832_v5 = vpop.permute.xlu1 %2831  ;;  %v2834_v52 = vpop.permute.xlu0 %2833  ;;  %v3179_v48 = vsel %vm3176_vm15, %v3114_v50, %v3146_v43  ;;  %v3088_v16 = vsel %vm3077_vm12, %v6073_v53, %v6095_v61 }
 0x318   : > { %v3209_v17 = vcombine.low %v3177_v38, %v3178_v33  ;;  %v3115_v49 = vsel %vm3111_vm14, %v3098_v44, %v2832_v5  ;;  %v3116_v22 = vsel %vm3111_vm14, %v3099_v40, %v2834_v52  ;;  %v3105_v7 = vsel %vm3094_vm13, %v3088_v16, %v6114_v31 }
 0x319   : > { %v3147_v15 = vrot.slane %v3115_v49, 7  ;;  %v3148_v46 = vrot.slane %v3116_v22, 7  ;;  %v3106_v38 = vsel %vm3094_vm13, %v3089_v10, %v6116_v24  ;;  %v3107_v5 = vsel %vm3094_vm13, %v6103_v60, %v6118_v57 }
 0x31a   : > { %v3217_v3 = vrot.slane %v3209_v17, %v6641_v0  ;;  %v3108_v60 = vsel %vm3094_vm13, %v6108_v26, %v6120_v19 }
 0x31b   : > { %v3180_v41 = vsel %vm3176_vm15, %v3115_v49, %v3147_v15  ;;  %v2836_v55 = vpop.permute.xlu1 %2835  ;;  %v2838_v23 = vpop.permute.xlu0 %2837  ;;  %v3181_v29 = vsel %vm3176_vm15, %v3116_v22, %v3148_v46 }
 0x31c   : > { %v3210_v63 = vcombine.low %v3179_v48, %v3180_v41  ;;  %v3117_v47 = vsel %vm3111_vm14, %v3100_v6, %v2836_v55  ;;  %v3118_v1 = vsel %vm3111_vm14, %v3101_v42, %v2838_v23  ;;  %v3092_v42 = vsel %vm3077_vm12, %v6081_v25, %v6105_v59 }
 0x31d   : > { %v3149_v20 = vrot.slane %v3117_v47, 7  ;;  %v3150_v27 = vrot.slane %v3118_v1, 7  ;;  %v3109_v57 = vsel %vm3094_vm13, %v3092_v42, %v6122_v28  ;;  %v3093_v28 = vsel %vm3077_vm12, %v6084_v62, %v6110_v13 }
 0x31e   : > { %v3224_v51 = vrot.slane %v3210_v63, %v6641_v0 }
 0x31f   : > { %v3182_v35 = vsel %vm3176_vm15, %v3117_v47, %v3149_v20  ;;  %v2840_v30 = vpop.permute.xlu1 %2839  ;;  %v2842_v56 = vpop.permute.xlu0 %2841  ;;  %v3183_v50 = vsel %vm3176_vm15, %v3118_v1, %v3150_v27  ;;  %v3110_v1 = vsel %vm3094_vm13, %v3093_v28, %v6125_v9 }
 0x320   : > { %v3225_v36 = vcombine.low %v3217_v3, %v3224_v51  ;;  %v3226_v32 = vcombine.low %v3181_v29, %v3182_v35  ;;  %v3119_v8 = vsel %vm3111_vm14, %v3102_v4, %v2840_v30  ;;  %v3120_v39 = vsel %vm3111_vm14, %v3103_v18, %v2842_v56 }
 0x321   : > { %v3151_v34 = vrot.slane %v3119_v8, 7  ;;  %v3152_v14 = vrot.slane %v3120_v39, 7 }
 0x322   : > { %3282 = vst.msk [vmem:[%s4102_s19] sm:$0xff] %vm3281_vm0, %v3225_v36  ;;  %v3234_v33 = vrot.slane %v3226_v32, %v6641_v0 }
 0x323   : > { %3287 = vst.msk [vmem:[%s4102_s19] sm:$0xff] %vm3286_vm1, %v6636_v2  ;;  %v3184_v58 = vsel %vm3176_vm15, %v3119_v8, %v3151_v34  ;;  %v2844_v44 = vpop.permute.xlu1 %2843  ;;  %v2846_v40 = vpop.permute.xlu0 %2845  ;;  %v3185_v52 = vsel %vm3176_vm15, %v3120_v39, %v3152_v14 }
 0x324   : > { %v3227_v53 = vcombine.low %v3183_v50, %v3184_v58  ;;  %v3121_v61 = vsel %vm3111_vm14, %v3104_v21, %v2844_v44  ;;  %v3122_v45 = vsel %vm3111_vm14, %v3105_v7, %v2846_v40 }
 0x325   : > { %v3153_v31 = vrot.slane %v3121_v61, 7  ;;  %v3154_v49 = vrot.slane %v3122_v45, 7 }
 0x326   : > { %v3241_v43 = vrot.slane %v3227_v53, %v6641_v0 }
 0x327   : > { %v3186_v17 = vsel %vm3176_vm15, %v3121_v61, %v3153_v31  ;;  %v2848_v37 = vpop.permute.xlu1 %2847  ;;  %v2850_v11 = vpop.permute.xlu0 %2849  ;;  %v3187_v48 = vsel %vm3176_vm15, %v3122_v45, %v3154_v49 }
 0x328   : > { %v3242_v22 = vcombine.low %v3234_v33, %v3241_v43  ;;  %v3243_v15 = vcombine.low %v3185_v52, %v3186_v17  ;;  %v3123_v24 = vsel %vm3111_vm14, %v3106_v38, %v2848_v37  ;;  %v3124_v54 = vsel %vm3111_vm14, %v3107_v5, %v2850_v11 }
 0x329   : > { %v3155_v6 = vrot.slane %v3123_v24, 7  ;;  %v3156_v46 = vrot.slane %v3124_v54, 7 }
 0x32a   : > { %3283 = vst.msk [vmem:[%s4102_s19 + $0x8] sm:$0xff] %vm3281_vm0, %v3242_v22  ;;  %v3251_v63 = vrot.slane %v3243_v15, %v6641_v0 }
 0x32b   : > { %3288 = vst.msk [vmem:[%s4102_s19 + $0x8] sm:$0xff] %vm3286_vm1, %v6636_v2  ;;  %v3188_v41 = vsel %vm3176_vm15, %v3123_v24, %v3155_v6  ;;  %v2852_v55 = vpop.permute.xlu1 %2851  ;;  %v2854_v23 = vpop.permute.xlu0 %2853  ;;  %v3189_v12 = vsel %vm3176_vm15, %v3124_v54, %v3156_v46 }
 0x32c   : > { %v3244_v25 = vcombine.low %v3187_v48, %v3188_v41  ;;  %v3125_v59 = vsel %vm3111_vm14, %v3108_v60, %v2852_v55  ;;  %v3126_v26 = vsel %vm3111_vm14, %v3109_v57, %v2854_v23 }
 0x32d   : > { %v3157_v19 = vrot.slane %v3125_v59, 7  ;;  %v3158_v4 = vrot.slane %v3126_v26, 7 }
 0x32e   : > { %v3258_v47 = vrot.slane %v3244_v25, %v6641_v0 }
 0x32f   : > { %v3190_v20 = vsel %vm3176_vm15, %v3125_v59, %v3157_v19  ;;  %v2856_v3 = vpop.permute.xlu1 %2855  ;;  %v3191_v13 = vsel %vm3176_vm15, %v3126_v26, %v3158_v4 }
 0x330   : > { %v3259_v51 = vcombine.low %v3251_v63, %v3258_v47  ;;  %v3260_v18 = vcombine.low %v3189_v12, %v3190_v20  ;;  %v3127_v29 = vsel %vm3111_vm14, %v3110_v1, %v2856_v3 }
 0x331   : > { %v3159_v62 = vrot.slane %v3127_v29, 7 }
 0x332   : > { %3284 = vst.msk [vmem:[%s4102_s19 + $0x10] sm:$0xff] %vm3281_vm0, %v3259_v51  ;;  %v3268_v27 = vrot.slane %v3260_v18, %v6641_v0 }
 0x333   : > { %3289 = vst.msk [vmem:[%s4102_s19 + $0x10] sm:$0xff] %vm3286_vm1, %v6636_v2  ;;  %v3192_v9 = vsel %vm3176_vm15, %v3127_v29, %v3159_v62 }
 0x334   : > { %v3261_v35 = vcombine.low %v3191_v13, %v3192_v9 }
 0x336   : > { %v3275_v30 = vrot.slane %v3261_v35, %v6641_v0 }
 0x338   : > { %v3276_v56 = vcombine.low %v3268_v27, %v3275_v30 }
 0x33a   : > { %3285 = vst.msk [vmem:[%s4102_s19 + $0x18] sm:$0xff] %vm3281_vm0, %v3276_v56 }
 0x33b   : > { %3290 = vst.msk [vmem:[%s4102_s19 + $0x18] sm:$0xff] %vm3286_vm1, %v6636_v2 }
 0x33c PF: > { %p3570_p8 = scmp.ne.s32.totalorder %s3890_s11, 1 }
 0x33e   : > { %3294 = sbr.rel (%p3570_p8) target bundleno = 838 (0x346), region = 36 }
 0x343   : > { %vm3295_vm2 = vcmask 269312   ;;  %v3961_v36 = vmov 0.0  }
 0x344   : > { %3296 = vst.msk [vmem:[%s4102_s19] sm:$0xff] %vm3295_vm2, %v3961_v36  ;;  %3297 = vst.msk [vmem:[%s4102_s19 + $0x8] sm:$0xff] %vm3295_vm2, %v3961_v36 }
 0x345   : > { %3298 = vst.msk [vmem:[%s4102_s19 + $0x10] sm:$0xff] %vm3295_vm2, %v3961_v36  ;;  %3299 = vst.msk [vmem:[%s4102_s19 + $0x18] sm:$0xff] %vm3295_vm2, %v3961_v36 }
 0x346 PF: > { %3306 = sbr.rel (!%p4054_p12) target bundleno = 882 (0x372), region = 40  ;;  %s3572_s6 = sshll.u32 (%p4054_p12), %s3890_s11, 2 }
 0x347   : > { %s3590_s23 = smul.u32 (%p4054_p12), 5, %s3894_s12  ;;  %s3308_s20 = ssub.s32 (%p4054_p12), 5, %s3572_s6 }
 0x348   : > { %p3309_p6 = scmp.lt.s32.totalorder (%p4054_p12), %s3308_s20, 4 }
 0x349   : > { %s3314_s30 = sadd.s32 (%p4054_p12), %s3590_s23, %s3572_s6 }
 0x34a   : > { %s3575_s29 = sshll.u32 (%p4054_p12), %s3314_s30, 3 }
 0x34b   : > { %s6661_s20 = smov (!%p3309_p6, %s3308_s20), 4  ;;  %s6248_s8 = scalar_lea.vmem %s6316_s1, %s3575_s29  }
 0x34c   : > { %s3573_s16 = sshll.u32 %s6661_s20, 7 }
 0x34d   : > { %p3576_p7 = scmp.eq.s32.totalorder %s3573_s16, 0 }
 0x34e   : > { %s6252_s28 = sshrl.u32 (!%p3576_p7), %s6661_s20, 2 }
 0x34f   : > { %3319 = sbr.rel (%p3576_p7) target bundleno = 882 (0x372), region = 44  ;;  %p3577_p12 = scmp.le.s32.totalorder (!%p3576_p7), %s6252_s28, 0 }
 0x354   : > { %3500 = sbr.rel (%p3577_p12) target bundleno = 865 (0x361), region = 126  ;;  %s6642_s11 = smov (!%p3577_p12), %s6248_s8 }
 0x355   : > { %s6643_s12 = smov (!%p3577_p12), %s4102_s19  ;;  %s6261_s22 = smov (!%p3577_p12), 0  }
 0x356   : > { %s3920_s21 = smov (!%p3577_p12), 0  }
 0x359 LB: >> { %v3388_v2 = vld [vmem:[%s3914_s12] sm:$0xff]  ;;  %v3390_v0 = vld [vmem:[%s3914_s12 + $0x8] sm:$0xff]  ;;  %v3392_v32 = vld [vmem:[%s3914_s12 + $0x10] sm:$0xff]  ;;  %s3396_s24 = sadd.s32 1, %s3918_s22  ;;  %s3382_s21 = sadd.s32 1, %s3922_s21   ;;  %s3922_s21 = sphi %s3920_s21, %s3382_s21   ;;  %s3918_s22 = sphi %s6261_s22, %s6644_s22   ;;  %s3914_s12 = sphi %s6643_s12, %s3401_s12   ;;  %s3910_s11 = sphi %s6642_s11, %s3402_s11  }
 0x35a   : >> { %3389 = vst [vmem:[%s3910_s11] sm:$0xff] %v3388_v2  ;;  %3391 = vst [vmem:[%s3910_s11 + $0x8] sm:$0xff] %v3390_v0  ;;  %v3394_v8 = vld [vmem:[%s3914_s12 + $0x18] sm:$0xff]  ;;  %p3397_p9 = scmp.ge.s32.totalorder %s3396_s24, %s6252_s28  ;;  %p3381_p10 = scmp.ge.s32.totalorder %s3382_s21, %s6252_s28 }
 0x35b   : >> { %3393 = vst [vmem:[%s3910_s11 + $0x10] sm:$0xff] %v3392_v32  ;;  %3395 = vst [vmem:[%s3910_s11 + $0x18] sm:$0xff] %v3394_v8 }
 0x35c   : >> { %s6663_s24 = smov (%p3397_p9, %s3396_s24), 0  ;;  %3384 = sbr.rel (!%p3381_p10) target bundleno = 857 (0x359), region = 132 }
 0x35d   : >> { %s3578_s26 = sshll.u32 %s6663_s24, 5  ;;  %s6644_s22 = smov %s6663_s24 }
 0x35e   : >> { %s3401_s12 = scalar_lea.vmem %s4102_s19, %s3578_s26 [#allocation4]   ;;  %s3402_s11 = scalar_lea.vmem %s6248_s8, %s3578_s26  }
 0x361 PF: > { %s6277_s5 = sand.u32 3, %s6661_s20   ;;  %s3588_s3 = sshll.u32 %s6252_s28, 5 }
 0x362   : > { %s3407_s6 = scalar_lea.vmem %s4102_s19, %s3588_s3 [#allocation4]   ;;  %s3409_s23 = scalar_lea.vmem %s6248_s8, %s3588_s3  }
 0x363   : > { %p3583_p11 = scmp.le.s32.totalorder %s6277_s5, 0 }
 0x364   : > { %s3924_s30 = smov (!%p3583_p11), %s3409_s23   ;;  %s3928_s29 = smov (!%p3583_p11), %s3407_s6  }
 0x365   : > { %3514 = sbr.rel (%p3583_p11) target bundleno = 882 (0x372), region = 137  ;;  %s3932_s2 = smov (!%p3583_p11), 0  }
 0x366   : > { %s3936_s4 = smov (!%p3583_p11), 0  }
 0x36a LB: >> { %v3419_v39 = vld [vmem:[%s3930_s29] sm:$0xff]  ;;  %s3421_s20 = sadd.s32 1, %s3934_s2  ;;  %s3413_s4 = sadd.s32 1, %s3938_s4   ;;  %s3938_s4 = sphi %s3936_s4, %s3413_s4   ;;  %s3934_s2 = sphi %s3932_s2, %s3933_s2   ;;  %s3930_s29 = sphi %s3928_s29, %s3426_s29   ;;  %s3926_s30 = sphi %s3924_s30, %s3427_s30  }
 0x36b   : >> { %3420 = vst [vmem:[%s3926_s30] sm:$0xff] %v3419_v39  ;;  %p3422_p13 = scmp.ge.s32.totalorder %s3421_s20, %s6277_s5  ;;  %p3412_p1 = scmp.ge.s32.totalorder %s3413_s4, %s6277_s5 }
 0x36d   : >> { %s6665_s20 = smov (%p3422_p13, %s3421_s20), 0  ;;  %3415 = sbr.rel (!%p3412_p1) target bundleno = 874 (0x36a), region = 143 }
 0x36e   : >> { %s3584_s19 = sshll.u32 %s6665_s20, 3  ;;  %s3933_s2 = smov %s6665_s20  }
 0x36f   : >> { %s3426_s29 = scalar_lea.vmem %s3407_s6, %s3584_s19 [#allocation4]   ;;  %s3427_s30 = scalar_lea.vmem %s3409_s23, %s3584_s19  }
 0x372 PF: > { %s14_s15 = sadd.s32 1, %s3906_s15   ;;  %s6645_s6 = smov %s3874_s7 }
 0x373   : > { %p11_p3 = scmp.ge.s32.totalorder %s14_s15, 18   ;;  %s6646_s7 = smov %s4052_s27 }
 0x374   : > { %s6647_s8 = smov %s3882_s9  ;;  %s6648_s9 = smov %s3886_s10 }
 0x375   : > { %s6649_s10 = smov %s4046_s25  ;;  %s6650_s11 = smov %s3898_s13 }
 0x376   : > { %s6651_s12 = smov %s3902_s14  ;;  %s6652_s13 = smov %s6655_s17 }
 0x377   : > { %s6653_s14 = smov %s6659_s18  ;;  %13 = sbr.rel (!%p11_p3) target bundleno = 6 (0x6), region = 154 }
 0x37c   :  { %3443 = vsyncpa [#allocation3], 1 }
 0x37d   :  { %3445 = vsyncpa [#allocation3 + $0x1], 1 }

</bundles_post_ra>
